<compile_context>
chip_gen: v5e
topology: v5e:2x2
jax: 0.10.0
libtpu: 0.0.40
codegen_flags: <defaults>
</compile_context>

<pallas_src>
import functools

import jax
import jax.numpy as jnp
from jax.experimental import pallas as pl
from jax.experimental.pallas import tpu as pltpu


def _round_up(x, m):
    return (x + m - 1) // m * m


def _dynamics_kernel(h_ref, w1_ref, b1_ref, w2_ref, b2_ref, u_ref, e_ref,
                     hard_ref, probs_ref, *, L, C):
    """One batch tile: Linear -> ReLU -> Linear -> softmax -> inverse-CDF sample.

    All softmax / sampling math is done in the lane-dense (TB, L*C) layout;
    lanes [l*C, (l+1)*C) form latent group l.
    """
    TB = h_ref.shape[0]
    LC = L * C

    # ---- MLP: Linear -> ReLU -> Linear (bf16 MXU operands, f32 accumulate) ----
    h = h_ref[...].astype(jnp.bfloat16)          # in-kernel cast (hidden by pipeline)
    hid = jnp.dot(h, w1_ref[...], preferred_element_type=jnp.float32) + b1_ref[...]
    hid = jnp.maximum(hid, 0.0)                                         # ReLU
    logits = jnp.dot(hid.astype(jnp.bfloat16), w2_ref[...],
                     preferred_element_type=jnp.float32) + b2_ref[...]  # (TB, L*C)

    # Lane bookkeeping (C is a power of two).
    lane = jax.lax.broadcasted_iota(jnp.int32, (TB, LC), 1)
    lane_in_group = jnp.bitwise_and(lane, C - 1)

    def seg_prefix_max(x):
        s = 1
        while s < C:
            r = pltpu.roll(x, s, axis=1)                       # r[j] = x[j - s]
            x = jnp.maximum(x, jnp.where(lane_in_group >= s, r, x))
            s *= 2
        return x

    def seg_prefix_sum(x):
        s = 1
        while s < C:
            r = pltpu.roll(x, s, axis=1)
            x = x + jnp.where(lane_in_group >= s, r, 0.0)
            s *= 2
        return x

    def seg_broadcast_last(x):
        # For a per-group non-decreasing x, propagate the group-last value
        # (its maximum) back to every lane of the group.
        s = 1
        while s < C:
            r = pltpu.roll(x, LC - s, axis=1)                  # r[j] = x[j + s]
            x = jnp.maximum(x, jnp.where(lane_in_group < C - s, r, x))
            s *= 2
        return x

    # ---- numerically stable softmax over each C-group (fully lane-dense) ----
    gmax = seg_broadcast_last(seg_prefix_max(logits))          # per-lane group max
    e = jnp.exp(logits - gmax)                                 # EUP
    cdf = seg_prefix_sum(e)                                    # inclusive per-group CDF
    denom = seg_broadcast_last(cdf)                            # per-lane group sum (>= 1)
    inv = pl.reciprocal(denom, approx=True)                    # EUP, single pass
    probs = e * inv

    # ---- inverse-CDF categorical sample: one-hot at the first CDF crossing ----
    # u_full[b, l*C + j] = u[b, l]  (0/1 expansion matmul on the idle MXU).
    u_full = jnp.dot(u_ref[...], e_ref[...], preferred_element_type=jnp.float32)
    thresh = u_full * denom
    is_last = lane_in_group == (C - 1)
    ge = jnp.logical_or(cdf > thresh, is_last)   # guard: always land in last category
    ge_f = ge.astype(jnp.float32)
    prev = jnp.where(lane_in_group >= 1, pltpu.roll(ge_f, 1, axis=1), 0.0)
    hard = ge_f - prev                           # exactly one 1 per C-group

    hard_ref[...] = hard.astype(hard_ref.dtype)  # bf16 one-hot (exact 0/1)
    probs_ref[...] = probs.astype(probs_ref.dtype)


def dynamics_predictor(h, params, key, *, latent_size, latent_categories_size,
                       block_b=256):
    """Forward pass of DynamicsPredictor. Returns (sampled_straight, probs)."""
    w1, b1, w2, b2 = params
    B, R = h.shape
    D = w1.shape[1]
    L, C = latent_size, latent_categories_size
    LC = L * C
    assert w2.shape == (D, LC) and b1.shape == (1, D) and b2.shape == (1, LC)
    # TODO(synk): segmented lane scans assume a power-of-two C (DreamerV2 uses
    # 32); generalize lane_in_group to an explicit `% C` for other sizes.
    assert C > 0 and (C & (C - 1)) == 0

    # Batch tiling: rows per grid step (multiple of 8); ensure >= 2 grid steps
    # when the batch allows it so both v7x TensorCores get work.
    block_b = max(8, _round_up(block_b, 8))
    full = _round_up(B, 8)
    tb_cap = _round_up((B + 1) // 2, 8) if B >= 16 else full
    TB = min(block_b, full, tb_cap)
    Bp = _round_up(B, TB)
    if Bp != B:
        h = jnp.pad(h, ((0, Bp - B), (0, 0)))

    # Weights as bf16 MXU operands (keep them persistently bf16 upstream in a
    # real rollout loop); biases stay f32 (added to the f32 accumulator).
    # h is passed f32 and cast inside the kernel.
    w1_bf = w1.astype(jnp.bfloat16)
    w2_bf = w2.astype(jnp.bfloat16)
    b1_f32 = b1.astype(jnp.float32)
    b2_f32 = b2.astype(jnp.float32)

    # One uniform per (row, latent); expanded to its group's C lanes in-kernel
    # via the 0/1 matrix e_mat (keeps the kernel fully lane-dense).
    u = jax.random.uniform(key, (Bp, L), jnp.float32)
    e_mat = jnp.repeat(jnp.eye(L, dtype=jnp.float32), C, axis=1)      # (L, L*C)

    kernel = functools.partial(_dynamics_kernel, L=L, C=C)
    grid = (Bp // TB,)

    def make_call(single_buffer_weights):
        const_kw = dict(pipeline_mode=pl.Buffered(1)) if single_buffer_weights else {}

        def const_spec(shape):
            return pl.BlockSpec(shape, lambda i: (0, 0), **const_kw)

        in_specs = [
            pl.BlockSpec((TB, R), lambda i: (i, 0)),   # h   (batch-tiled, f32)
            const_spec((R, D)),                        # w1  (VMEM-resident, bf16)
            const_spec((1, D)),                        # b1  (f32)
            const_spec((D, LC)),                       # w2  (bf16)
            const_spec((1, LC)),                       # b2  (f32)
            pl.BlockSpec((TB, L), lambda i: (i, 0)),   # uniforms (batch-tiled)
            const_spec((L, LC)),                       # group-expansion matrix
        ]
        out_specs = (
            pl.BlockSpec((TB, LC), lambda i: (i, 0)),  # hard one-hot (bf16)
            pl.BlockSpec((TB, LC), lambda i: (i, 0)),  # probs (f32)
        )
        weight_bytes = (R * D + D * LC) * 2 + (D + LC) * 4 + L * LC * 4
        weight_vmem = weight_bytes if single_buffer_weights else 2 * weight_bytes
        io_vmem = 2 * TB * (R * 4 + L * 4 + LC * 2 + LC * 4)  # double-buffered tiles
        tmp_vmem = 12 * TB * LC * 4                           # live softmax temporaries
        vmem_limit = int(min(64 << 20,
                             max(32 << 20,
                                 weight_vmem + io_vmem + tmp_vmem + (4 << 20))))
        cost = pl.CostEstimate(
            flops=2 * Bp * (R * D + D * LC + L * LC),
            transcendentals=2 * Bp * LC,                      # exp + reciprocal
            bytes_accessed=int(Bp * (R * 4 + L * 4 + LC * 2 + LC * 4) + weight_bytes),
        )
        return pl.pallas_call(
            kernel,
            out_shape=(jax.ShapeDtypeStruct((Bp, LC), jnp.bfloat16),   # hard
                       jax.ShapeDtypeStruct((Bp, LC), jnp.float32)),   # probs
            grid=grid,
            in_specs=in_specs,
            out_specs=out_specs,
            compiler_params=pltpu.CompilerParams(
                dimension_semantics=("parallel",),
                vmem_limit_bytes=vmem_limit),
            cost_estimate=cost,
        )

    args = (h, w1_bf, b1_f32, w2_bf, b2_f32, u, e_mat)
    try:
        hard2d, probs2d = make_call(True)(*args)
    except Exception:
        # pl.Buffered(1) single-buffered weights unsupported on this jax/libtpu
        # combo -> fall back to default double-buffered constant blocks.
        hard2d, probs2d = make_call(False)(*args)

    hard = hard2d[:B].astype(jnp.float32).reshape(B, L, C)
    probs = probs2d[:B].reshape(B, L, C)
    # Straight-through estimator (forward value == hard one-hot).
    # TODO(synk): wrap in jax.custom_vjp if gradients through probs are needed;
    # pallas_call itself has no autodiff rule.
    # TODO(synk): emit probs as bf16 too if downstream tolerates it (halves the
    # remaining output HBM traffic; biggest relative win on v5e).
    sampled_straight = hard + probs - jax.lax.stop_gradient(probs)
    return sampled_straight, probs


def init_params(key, recurrent_size, model_dim, latent_size, latent_categories_size):
    """PyTorch-like nn.Linear init, stored transposed as (in_features, out_features)."""
    k1, k2, k3, k4 = jax.random.split(key, 4)
    bound1 = 1.0 / (recurrent_size ** 0.5)
    bound2 = 1.0 / (model_dim ** 0.5)
    out_dim = latent_size * latent_categories_size
    w1 = jax.random.uniform(k1, (recurrent_size, model_dim), jnp.float32,
                            -bound1, bound1)
    b1 = jax.random.uniform(k2, (1, model_dim), jnp.float32, -bound1, bound1)
    w2 = jax.random.uniform(k3, (model_dim, out_dim), jnp.float32, -bound2, bound2)
    b2 = jax.random.uniform(k4, (1, out_dim), jnp.float32, -bound2, bound2)
    return w1, b1, w2, b2


if __name__ == "__main__":
    # Small, module-consistent shapes.
    B = 16
    recurrent_size = 32
    model_dim = 32
    latent_size = 8
    latent_categories_size = 16

    key = jax.random.PRNGKey(0)
    pkey, hkey, skey = jax.random.split(key, 3)
    params = init_params(pkey, recurrent_size, model_dim,
                         latent_size, latent_categories_size)
    h = jax.random.normal(hkey, (B, recurrent_size), jnp.float32)

    sampled_straight, probs = dynamics_predictor(
        h, params, skey,
        latent_size=latent_size,
        latent_categories_size=latent_categories_size)
    jax.block_until_ready((sampled_straight, probs))

    # ---- sanity checks ----
    L, C = latent_size, latent_categories_size
    assert sampled_straight.shape == (B, L, C)
    assert probs.shape == (B, L, C)
    # probs is a softmax (bf16 MXU + approximate-reciprocal tolerance).
    assert bool(jnp.all(probs >= 0.0))
    assert bool(jnp.allclose(jnp.sum(probs, axis=-1), 1.0, atol=1e-2))
    # Forward value of sampled_straight is the hard one-hot sample.
    assert bool(jnp.allclose(jnp.sum(sampled_straight, axis=-1), 1.0, atol=1e-5))
    assert bool(jnp.allclose(jnp.max(sampled_straight, axis=-1), 1.0, atol=1e-5))
    # Cross-check probs against a pure-JAX f32 reference of the same module.
    w1, b1, w2, b2 = params
    ref_hidden = jnp.maximum(h @ w1 + b1, 0.0)
    ref_logits = (ref_hidden @ w2 + b2).reshape(B, L, C)
    ref_probs = jax.nn.softmax(ref_logits, axis=-1)
    assert bool(jnp.allclose(probs, ref_probs, atol=0.05))

    print("KERNEL_OK")
</pallas_src>

<mosaic_0001>
module attributes {stable_mosaic.version = 11 : i64} {
  func.func @_dynamics_kernel(%arg0: i32, %arg1: memref<8x32xf32, #tpu.memory_space<vmem>>, %arg2: memref<32x32xbf16, #tpu.memory_space<vmem>>, %arg3: memref<1x32xf32, #tpu.memory_space<vmem>>, %arg4: memref<32x128xbf16, #tpu.memory_space<vmem>>, %arg5: memref<1x128xf32, #tpu.memory_space<vmem>>, %arg6: memref<8x8xf32, #tpu.memory_space<vmem>>, %arg7: memref<8x128xf32, #tpu.memory_space<vmem>>, %arg8: memref<8x128xbf16, #tpu.memory_space<vmem>>, %arg9: memref<8x128xf32, #tpu.memory_space<vmem>>) attributes {dimension_semantics = [#tpu.dimension_semantics<parallel>], iteration_bounds = array<i64: 2>, scalar_prefetch = 0 : i64, scratch_operands = 0 : i64, tpu.core_type = #tpu.core_type<tc>, window_params = [{transform_indices = @transform_0, window_bounds = array<i64: 8, 32>}, {pipeline_mode = #tpu.pipeline_mode<synchronous>, transform_indices = @transform_1, window_bounds = array<i64: 32, 32>}, {pipeline_mode = #tpu.pipeline_mode<synchronous>, transform_indices = @transform_2, window_bounds = array<i64: 1, 32>}, {pipeline_mode = #tpu.pipeline_mode<synchronous>, transform_indices = @transform_3, window_bounds = array<i64: 32, 128>}, {pipeline_mode = #tpu.pipeline_mode<synchronous>, transform_indices = @transform_4, window_bounds = array<i64: 1, 128>}, {transform_indices = @transform_5, window_bounds = array<i64: 8, 8>}, {pipeline_mode = #tpu.pipeline_mode<synchronous>, transform_indices = @transform_6, window_bounds = array<i64: 8, 128>}, {transform_indices = @transform_7, window_bounds = array<i64: 8, 128>}, {transform_indices = @transform_8, window_bounds = array<i64: 8, 128>}]} {
    %c0 = arith.constant 0 : index
    %c0_0 = arith.constant 0 : index
    %0 = vector.load %arg1[%c0, %c0_0] : memref<8x32xf32, #tpu.memory_space<vmem>>, vector<8x32xf32>
    %1 = arith.truncf %0 : vector<8x32xf32> to vector<8x32xbf16>
    %c0_1 = arith.constant 0 : index
    %c0_2 = arith.constant 0 : index
    %2 = vector.load %arg2[%c0_1, %c0_2] : memref<32x32xbf16, #tpu.memory_space<vmem>>, vector<32x32xbf16>
    %cst = arith.constant dense<0.000000e+00> : vector<8x32xf32>
    %3 = tpu.matmul %1, %2, %cst {dimension_numbers = #tpu.dot_dimension_numbers<[1], [0], [0], [1], [0, 0, 1, 1], [], []>} : vector<8x32xbf16>, vector<32x32xbf16>, vector<8x32xf32> -> vector<8x32xf32>
    %c0_3 = arith.constant 0 : index
    %c0_4 = arith.constant 0 : index
    %4 = vector.load %arg3[%c0_3, %c0_4] : memref<1x32xf32, #tpu.memory_space<vmem>>, vector<1x32xf32>
    %5 = vector.broadcast %4 : vector<1x32xf32> to vector<8x32xf32>
    %6 = arith.addf %3, %5 : vector<8x32xf32>
    %cst_5 = arith.constant 0.000000e+00 : f32
    %7 = vector.broadcast %cst_5 : f32 to vector<8x32xf32>
    %8 = arith.maximumf %6, %7 : vector<8x32xf32>
    %9 = arith.truncf %8 : vector<8x32xf32> to vector<8x32xbf16>
    %c0_6 = arith.constant 0 : index
    %c0_7 = arith.constant 0 : index
    %10 = vector.load %arg4[%c0_6, %c0_7] : memref<32x128xbf16, #tpu.memory_space<vmem>>, vector<32x128xbf16>
    %cst_8 = arith.constant dense<0.000000e+00> : vector<8x128xf32>
    %11 = tpu.matmul %9, %10, %cst_8 {dimension_numbers = #tpu.dot_dimension_numbers<[1], [0], [0], [1], [0, 0, 1, 1], [], []>} : vector<8x32xbf16>, vector<32x128xbf16>, vector<8x128xf32> -> vector<8x128xf32>
    %c0_9 = arith.constant 0 : index
    %c0_10 = arith.constant 0 : index
    %12 = vector.load %arg5[%c0_9, %c0_10] : memref<1x128xf32, #tpu.memory_space<vmem>>, vector<1x128xf32>
    %13 = vector.broadcast %12 : vector<1x128xf32> to vector<8x128xf32>
    %14 = arith.addf %11, %13 : vector<8x128xf32>
    %15 = tpu.iota {dimensions = array<i32: 1>} : vector<8x128xi32>
    %c15_i32 = arith.constant 15 : i32
    %16 = vector.broadcast %c15_i32 : i32 to vector<8x128xi32>
    %17 = arith.andi %15, %16 : vector<8x128xi32>
    %c1_i32 = arith.constant 1 : i32
    %18 = tpu.dynamic_rotate %14 by %c1_i32 dim 1 : vector<8x128xf32>, i32 -> vector<8x128xf32>
    %c1_i32_11 = arith.constant 1 : i32
    %19 = vector.broadcast %c1_i32_11 : i32 to vector<8x128xi32>
    %20 = arith.cmpi sge, %17, %19 : vector<8x128xi32>
    %21 = arith.select %20, %18, %14 : vector<8x128xi1>, vector<8x128xf32>
    %22 = arith.maximumf %14, %21 : vector<8x128xf32>
    %c2_i32 = arith.constant 2 : i32
    %23 = tpu.dynamic_rotate %22 by %c2_i32 dim 1 : vector<8x128xf32>, i32 -> vector<8x128xf32>
    %c2_i32_12 = arith.constant 2 : i32
    %24 = vector.broadcast %c2_i32_12 : i32 to vector<8x128xi32>
    %25 = arith.cmpi sge, %17, %24 : vector<8x128xi32>
    %26 = arith.select %25, %23, %22 : vector<8x128xi1>, vector<8x128xf32>
    %27 = arith.maximumf %22, %26 : vector<8x128xf32>
    %c4_i32 = arith.constant 4 : i32
    %28 = tpu.dynamic_rotate %27 by %c4_i32 dim 1 : vector<8x128xf32>, i32 -> vector<8x128xf32>
    %c4_i32_13 = arith.constant 4 : i32
    %29 = vector.broadcast %c4_i32_13 : i32 to vector<8x128xi32>
    %30 = arith.cmpi sge, %17, %29 : vector<8x128xi32>
    %31 = arith.select %30, %28, %27 : vector<8x128xi1>, vector<8x128xf32>
    %32 = arith.maximumf %27, %31 : vector<8x128xf32>
    %c8_i32 = arith.constant 8 : i32
    %33 = tpu.dynamic_rotate %32 by %c8_i32 dim 1 : vector<8x128xf32>, i32 -> vector<8x128xf32>
    %c8_i32_14 = arith.constant 8 : i32
    %34 = vector.broadcast %c8_i32_14 : i32 to vector<8x128xi32>
    %35 = arith.cmpi sge, %17, %34 : vector<8x128xi32>
    %36 = arith.select %35, %33, %32 : vector<8x128xi1>, vector<8x128xf32>
    %37 = arith.maximumf %32, %36 : vector<8x128xf32>
    %c127_i32 = arith.constant 127 : i32
    %38 = tpu.dynamic_rotate %37 by %c127_i32 dim 1 : vector<8x128xf32>, i32 -> vector<8x128xf32>
    %c15_i32_15 = arith.constant 15 : i32
    %39 = vector.broadcast %c15_i32_15 : i32 to vector<8x128xi32>
    %40 = arith.cmpi slt, %17, %39 : vector<8x128xi32>
    %41 = arith.select %40, %38, %37 : vector<8x128xi1>, vector<8x128xf32>
    %42 = arith.maximumf %37, %41 : vector<8x128xf32>
    %c126_i32 = arith.constant 126 : i32
    %43 = tpu.dynamic_rotate %42 by %c126_i32 dim 1 : vector<8x128xf32>, i32 -> vector<8x128xf32>
    %c14_i32 = arith.constant 14 : i32
    %44 = vector.broadcast %c14_i32 : i32 to vector<8x128xi32>
    %45 = arith.cmpi slt, %17, %44 : vector<8x128xi32>
    %46 = arith.select %45, %43, %42 : vector<8x128xi1>, vector<8x128xf32>
    %47 = arith.maximumf %42, %46 : vector<8x128xf32>
    %c124_i32 = arith.constant 124 : i32
    %48 = tpu.dynamic_rotate %47 by %c124_i32 dim 1 : vector<8x128xf32>, i32 -> vector<8x128xf32>
    %c12_i32 = arith.constant 12 : i32
    %49 = vector.broadcast %c12_i32 : i32 to vector<8x128xi32>
    %50 = arith.cmpi slt, %17, %49 : vector<8x128xi32>
    %51 = arith.select %50, %48, %47 : vector<8x128xi1>, vector<8x128xf32>
    %52 = arith.maximumf %47, %51 : vector<8x128xf32>
    %c120_i32 = arith.constant 120 : i32
    %53 = tpu.dynamic_rotate %52 by %c120_i32 dim 1 : vector<8x128xf32>, i32 -> vector<8x128xf32>
    %c8_i32_16 = arith.constant 8 : i32
    %54 = vector.broadcast %c8_i32_16 : i32 to vector<8x128xi32>
    %55 = arith.cmpi slt, %17, %54 : vector<8x128xi32>
    %56 = arith.select %55, %53, %52 : vector<8x128xi1>, vector<8x128xf32>
    %57 = arith.maximumf %52, %56 : vector<8x128xf32>
    %58 = arith.subf %14, %57 : vector<8x128xf32>
    %59 = math.exp %58 : vector<8x128xf32>
    %c1_i32_17 = arith.constant 1 : i32
    %60 = tpu.dynamic_rotate %59 by %c1_i32_17 dim 1 : vector<8x128xf32>, i32 -> vector<8x128xf32>
    %c1_i32_18 = arith.constant 1 : i32
    %61 = vector.broadcast %c1_i32_18 : i32 to vector<8x128xi32>
    %62 = arith.cmpi sge, %17, %61 : vector<8x128xi32>
    %cst_19 = arith.constant 0.000000e+00 : f32
    %63 = vector.broadcast %cst_19 : f32 to vector<8x128xf32>
    %64 = arith.select %62, %60, %63 : vector<8x128xi1>, vector<8x128xf32>
    %65 = arith.addf %59, %64 : vector<8x128xf32>
    %c2_i32_20 = arith.constant 2 : i32
    %66 = tpu.dynamic_rotate %65 by %c2_i32_20 dim 1 : vector<8x128xf32>, i32 -> vector<8x128xf32>
    %c2_i32_21 = arith.constant 2 : i32
    %67 = vector.broadcast %c2_i32_21 : i32 to vector<8x128xi32>
    %68 = arith.cmpi sge, %17, %67 : vector<8x128xi32>
    %cst_22 = arith.constant 0.000000e+00 : f32
    %69 = vector.broadcast %cst_22 : f32 to vector<8x128xf32>
    %70 = arith.select %68, %66, %69 : vector<8x128xi1>, vector<8x128xf32>
    %71 = arith.addf %65, %70 : vector<8x128xf32>
    %c4_i32_23 = arith.constant 4 : i32
    %72 = tpu.dynamic_rotate %71 by %c4_i32_23 dim 1 : vector<8x128xf32>, i32 -> vector<8x128xf32>
    %c4_i32_24 = arith.constant 4 : i32
    %73 = vector.broadcast %c4_i32_24 : i32 to vector<8x128xi32>
    %74 = arith.cmpi sge, %17, %73 : vector<8x128xi32>
    %cst_25 = arith.constant 0.000000e+00 : f32
    %75 = vector.broadcast %cst_25 : f32 to vector<8x128xf32>
    %76 = arith.select %74, %72, %75 : vector<8x128xi1>, vector<8x128xf32>
    %77 = arith.addf %71, %76 : vector<8x128xf32>
    %c8_i32_26 = arith.constant 8 : i32
    %78 = tpu.dynamic_rotate %77 by %c8_i32_26 dim 1 : vector<8x128xf32>, i32 -> vector<8x128xf32>
    %c8_i32_27 = arith.constant 8 : i32
    %79 = vector.broadcast %c8_i32_27 : i32 to vector<8x128xi32>
    %80 = arith.cmpi sge, %17, %79 : vector<8x128xi32>
    %cst_28 = arith.constant 0.000000e+00 : f32
    %81 = vector.broadcast %cst_28 : f32 to vector<8x128xf32>
    %82 = arith.select %80, %78, %81 : vector<8x128xi1>, vector<8x128xf32>
    %83 = arith.addf %77, %82 : vector<8x128xf32>
    %c127_i32_29 = arith.constant 127 : i32
    %84 = tpu.dynamic_rotate %83 by %c127_i32_29 dim 1 : vector<8x128xf32>, i32 -> vector<8x128xf32>
    %c15_i32_30 = arith.constant 15 : i32
    %85 = vector.broadcast %c15_i32_30 : i32 to vector<8x128xi32>
    %86 = arith.cmpi slt, %17, %85 : vector<8x128xi32>
    %87 = arith.select %86, %84, %83 : vector<8x128xi1>, vector<8x128xf32>
    %88 = arith.maximumf %83, %87 : vector<8x128xf32>
    %c126_i32_31 = arith.constant 126 : i32
    %89 = tpu.dynamic_rotate %88 by %c126_i32_31 dim 1 : vector<8x128xf32>, i32 -> vector<8x128xf32>
    %c14_i32_32 = arith.constant 14 : i32
    %90 = vector.broadcast %c14_i32_32 : i32 to vector<8x128xi32>
    %91 = arith.cmpi slt, %17, %90 : vector<8x128xi32>
    %92 = arith.select %91, %89, %88 : vector<8x128xi1>, vector<8x128xf32>
    %93 = arith.maximumf %88, %92 : vector<8x128xf32>
    %c124_i32_33 = arith.constant 124 : i32
    %94 = tpu.dynamic_rotate %93 by %c124_i32_33 dim 1 : vector<8x128xf32>, i32 -> vector<8x128xf32>
    %c12_i32_34 = arith.constant 12 : i32
    %95 = vector.broadcast %c12_i32_34 : i32 to vector<8x128xi32>
    %96 = arith.cmpi slt, %17, %95 : vector<8x128xi32>
    %97 = arith.select %96, %94, %93 : vector<8x128xi1>, vector<8x128xf32>
    %98 = arith.maximumf %93, %97 : vector<8x128xf32>
    %c120_i32_35 = arith.constant 120 : i32
    %99 = tpu.dynamic_rotate %98 by %c120_i32_35 dim 1 : vector<8x128xf32>, i32 -> vector<8x128xf32>
    %c8_i32_36 = arith.constant 8 : i32
    %100 = vector.broadcast %c8_i32_36 : i32 to vector<8x128xi32>
    %101 = arith.cmpi slt, %17, %100 : vector<8x128xi32>
    %102 = arith.select %101, %99, %98 : vector<8x128xi1>, vector<8x128xf32>
    %103 = arith.maximumf %98, %102 : vector<8x128xf32>
    %104 = tpu.reciprocal %103 {approx = true} : vector<8x128xf32> -> vector<8x128xf32>
    %105 = arith.mulf %59, %104 : vector<8x128xf32>
    %c0_37 = arith.constant 0 : index
    %c0_38 = arith.constant 0 : index
    %106 = vector.load %arg6[%c0_37, %c0_38] : memref<8x8xf32, #tpu.memory_space<vmem>>, vector<8x8xf32>
    %c0_39 = arith.constant 0 : index
    %c0_40 = arith.constant 0 : index
    %107 = vector.load %arg7[%c0_39, %c0_40] : memref<8x128xf32, #tpu.memory_space<vmem>>, vector<8x128xf32>
    %cst_41 = arith.constant dense<0.000000e+00> : vector<8x128xf32>
    %108 = tpu.matmul %106, %107, %cst_41 {dimension_numbers = #tpu.dot_dimension_numbers<[1], [0], [0], [1], [0, 0, 1, 1], [], []>} : vector<8x8xf32>, vector<8x128xf32>, vector<8x128xf32> -> vector<8x128xf32>
    %109 = arith.mulf %108, %103 : vector<8x128xf32>
    %c15_i32_42 = arith.constant 15 : i32
    %110 = vector.broadcast %c15_i32_42 : i32 to vector<8x128xi32>
    %111 = arith.cmpi eq, %17, %110 : vector<8x128xi32>
    %112 = arith.cmpf ogt, %83, %109 : vector<8x128xf32>
    %113 = arith.ori %112, %111 : vector<8x128xi1>
    %114 = arith.extui %113 : vector<8x128xi1> to vector<8x128xi32>
    %115 = arith.sitofp %114 : vector<8x128xi32> to vector<8x128xf32>
    %c1_i32_43 = arith.constant 1 : i32
    %116 = vector.broadcast %c1_i32_43 : i32 to vector<8x128xi32>
    %117 = arith.cmpi sge, %17, %116 : vector<8x128xi32>
    %c1_i32_44 = arith.constant 1 : i32
    %118 = tpu.dynamic_rotate %115 by %c1_i32_44 dim 1 : vector<8x128xf32>, i32 -> vector<8x128xf32>
    %cst_45 = arith.constant 0.000000e+00 : f32
    %119 = vector.broadcast %cst_45 : f32 to vector<8x128xf32>
    %120 = arith.select %117, %118, %119 : vector<8x128xi1>, vector<8x128xf32>
    %121 = arith.subf %115, %120 : vector<8x128xf32>
    %122 = arith.truncf %121 : vector<8x128xf32> to vector<8x128xbf16>
    %c0_46 = arith.constant 0 : index
    %c0_47 = arith.constant 0 : index
    %123 = vector.load %arg8[%c0_46, %c0_47] : memref<8x128xbf16, #tpu.memory_space<vmem>>, vector<8x128xbf16>
    tpu.vector_store %arg8[%c0_46, %c0_47], %122 {strides = array<i32>} : memref<8x128xbf16, #tpu.memory_space<vmem>>, vector<8x128xbf16>,
    %c0_48 = arith.constant 0 : index
    %c0_49 = arith.constant 0 : index
    %124 = vector.load %arg9[%c0_48, %c0_49] : memref<8x128xf32, #tpu.memory_space<vmem>>, vector<8x128xf32>
    tpu.vector_store %arg9[%c0_48, %c0_49], %105 {strides = array<i32>} : memref<8x128xf32, #tpu.memory_space<vmem>>, vector<8x128xf32>,
    return
  }
  func.func @transform_0(%arg0: i32) -> (i32, i32) {
    %c0_i32 = arith.constant 0 : i32
    %c0_i32_0 = arith.constant 0 : i32
    return %arg0, %c0_i32 : i32, i32
  }
  func.func @transform_1(%arg0: i32) -> (i32, i32) {
    %c0_i32 = arith.constant 0 : i32
    %c0_i32_0 = arith.constant 0 : i32
    %c0_i32_1 = arith.constant 0 : i32
    return %c0_i32, %c0_i32_0 : i32, i32
  }
  func.func @transform_2(%arg0: i32) -> (i32, i32) {
    %c0_i32 = arith.constant 0 : i32
    %c0_i32_0 = arith.constant 0 : i32
    %c0_i32_1 = arith.constant 0 : i32
    return %c0_i32, %c0_i32_0 : i32, i32
  }
  func.func @transform_3(%arg0: i32) -> (i32, i32) {
    %c0_i32 = arith.constant 0 : i32
    %c0_i32_0 = arith.constant 0 : i32
    %c0_i32_1 = arith.constant 0 : i32
    return %c0_i32, %c0_i32_0 : i32, i32
  }
  func.func @transform_4(%arg0: i32) -> (i32, i32) {
    %c0_i32 = arith.constant 0 : i32
    %c0_i32_0 = arith.constant 0 : i32
    %c0_i32_1 = arith.constant 0 : i32
    return %c0_i32, %c0_i32_0 : i32, i32
  }
  func.func @transform_5(%arg0: i32) -> (i32, i32) {
    %c0_i32 = arith.constant 0 : i32
    %c0_i32_0 = arith.constant 0 : i32
    return %arg0, %c0_i32 : i32, i32
  }
  func.func @transform_6(%arg0: i32) -> (i32, i32) {
    %c0_i32 = arith.constant 0 : i32
    %c0_i32_0 = arith.constant 0 : i32
    %c0_i32_1 = arith.constant 0 : i32
    return %c0_i32, %c0_i32_0 : i32, i32
  }
  func.func @transform_7(%arg0: i32) -> (i32, i32) {
    %c0_i32 = arith.constant 0 : i32
    %c0_i32_0 = arith.constant 0 : i32
    return %arg0, %c0_i32 : i32, i32
  }
  func.func @transform_8(%arg0: i32) -> (i32, i32) {
    %c0_i32 = arith.constant 0 : i32
    %c0_i32_0 = arith.constant 0 : i32
    return %arg0, %c0_i32 : i32, i32
  }
}

module attributes {stable_mosaic.version = 11 : i64} {
  func.func @_dynamics_kernel(%arg0: i32, %arg1: memref<8x32xf32, #tpu.memory_space<vmem>>, %arg2: memref<32x32xbf16, #tpu.memory_space<vmem>>, %arg3: memref<1x32xf32, #tpu.memory_space<vmem>>, %arg4: memref<32x128xbf16, #tpu.memory_space<vmem>>, %arg5: memref<1x128xf32, #tpu.memory_space<vmem>>, %arg6: memref<8x8xf32, #tpu.memory_space<vmem>>, %arg7: memref<8x128xf32, #tpu.memory_space<vmem>>, %arg8: memref<8x128xbf16, #tpu.memory_space<vmem>>, %arg9: memref<8x128xf32, #tpu.memory_space<vmem>>) attributes {dimension_semantics = [#tpu.dimension_semantics<parallel>], iteration_bounds = array<i64: 2>, scalar_prefetch = 0 : i64, scratch_operands = 0 : i64, tpu.core_type = #tpu.core_type<tc>, window_params = [{transform_indices = @transform_0, window_bounds = array<i64: 8, 32>}, {pipeline_mode = #tpu.pipeline_mode<synchronous>, transform_indices = @transform_1, window_bounds = array<i64: 32, 32>}, {pipeline_mode = #tpu.pipeline_mode<synchronous>, transform_indices = @transform_2, window_bounds = array<i64: 1, 32>}, {pipeline_mode = #tpu.pipeline_mode<synchronous>, transform_indices = @transform_3, window_bounds = array<i64: 32, 128>}, {pipeline_mode = #tpu.pipeline_mode<synchronous>, transform_indices = @transform_4, window_bounds = array<i64: 1, 128>}, {transform_indices = @transform_5, window_bounds = array<i64: 8, 8>}, {pipeline_mode = #tpu.pipeline_mode<synchronous>, transform_indices = @transform_6, window_bounds = array<i64: 8, 128>}, {transform_indices = @transform_7, window_bounds = array<i64: 8, 128>}, {transform_indices = @transform_8, window_bounds = array<i64: 8, 128>}]} {
    %c0 = arith.constant 0 : index
    %c0_0 = arith.constant 0 : index
    %0 = vector.load %arg1[%c0, %c0_0] : memref<8x32xf32, #tpu.memory_space<vmem>>, vector<8x32xf32>
    %1 = arith.truncf %0 : vector<8x32xf32> to vector<8x32xbf16>
    %c0_1 = arith.constant 0 : index
    %c0_2 = arith.constant 0 : index
    %2 = vector.load %arg2[%c0_1, %c0_2] : memref<32x32xbf16, #tpu.memory_space<vmem>>, vector<32x32xbf16>
    %cst = arith.constant dense<0.000000e+00> : vector<8x32xf32>
    %3 = tpu.matmul %1, %2, %cst {dimension_numbers = #tpu.dot_dimension_numbers<[1], [0], [0], [1], [0, 0, 1, 1], [], []>} : vector<8x32xbf16>, vector<32x32xbf16>, vector<8x32xf32> -> vector<8x32xf32>
    %c0_3 = arith.constant 0 : index
    %c0_4 = arith.constant 0 : index
    %4 = vector.load %arg3[%c0_3, %c0_4] : memref<1x32xf32, #tpu.memory_space<vmem>>, vector<1x32xf32>
    %5 = vector.broadcast %4 : vector<1x32xf32> to vector<8x32xf32>
    %6 = arith.addf %3, %5 : vector<8x32xf32>
    %cst_5 = arith.constant 0.000000e+00 : f32
    %7 = vector.broadcast %cst_5 : f32 to vector<8x32xf32>
    %8 = arith.maximumf %6, %7 : vector<8x32xf32>
    %9 = arith.truncf %8 : vector<8x32xf32> to vector<8x32xbf16>
    %c0_6 = arith.constant 0 : index
    %c0_7 = arith.constant 0 : index
    %10 = vector.load %arg4[%c0_6, %c0_7] : memref<32x128xbf16, #tpu.memory_space<vmem>>, vector<32x128xbf16>
    %cst_8 = arith.constant dense<0.000000e+00> : vector<8x128xf32>
    %11 = tpu.matmul %9, %10, %cst_8 {dimension_numbers = #tpu.dot_dimension_numbers<[1], [0], [0], [1], [0, 0, 1, 1], [], []>} : vector<8x32xbf16>, vector<32x128xbf16>, vector<8x128xf32> -> vector<8x128xf32>
    %c0_9 = arith.constant 0 : index
    %c0_10 = arith.constant 0 : index
    %12 = vector.load %arg5[%c0_9, %c0_10] : memref<1x128xf32, #tpu.memory_space<vmem>>, vector<1x128xf32>
    %13 = vector.broadcast %12 : vector<1x128xf32> to vector<8x128xf32>
    %14 = arith.addf %11, %13 : vector<8x128xf32>
    %15 = tpu.iota {dimensions = array<i32: 1>} : vector<8x128xi32>
    %c15_i32 = arith.constant 15 : i32
    %16 = vector.broadcast %c15_i32 : i32 to vector<8x128xi32>
    %17 = arith.andi %15, %16 : vector<8x128xi32>
    %c1_i32 = arith.constant 1 : i32
    %18 = tpu.dynamic_rotate %14 by %c1_i32 dim 1 : vector<8x128xf32>, i32 -> vector<8x128xf32>
    %c1_i32_11 = arith.constant 1 : i32
    %19 = vector.broadcast %c1_i32_11 : i32 to vector<8x128xi32>
    %20 = arith.cmpi sge, %17, %19 : vector<8x128xi32>
    %21 = arith.select %20, %18, %14 : vector<8x128xi1>, vector<8x128xf32>
    %22 = arith.maximumf %14, %21 : vector<8x128xf32>
    %c2_i32 = arith.constant 2 : i32
    %23 = tpu.dynamic_rotate %22 by %c2_i32 dim 1 : vector<8x128xf32>, i32 -> vector<8x128xf32>
    %c2_i32_12 = arith.constant 2 : i32
    %24 = vector.broadcast %c2_i32_12 : i32 to vector<8x128xi32>
    %25 = arith.cmpi sge, %17, %24 : vector<8x128xi32>
    %26 = arith.select %25, %23, %22 : vector<8x128xi1>, vector<8x128xf32>
    %27 = arith.maximumf %22, %26 : vector<8x128xf32>
    %c4_i32 = arith.constant 4 : i32
    %28 = tpu.dynamic_rotate %27 by %c4_i32 dim 1 : vector<8x128xf32>, i32 -> vector<8x128xf32>
    %c4_i32_13 = arith.constant 4 : i32
    %29 = vector.broadcast %c4_i32_13 : i32 to vector<8x128xi32>
    %30 = arith.cmpi sge, %17, %29 : vector<8x128xi32>
    %31 = arith.select %30, %28, %27 : vector<8x128xi1>, vector<8x128xf32>
    %32 = arith.maximumf %27, %31 : vector<8x128xf32>
    %c8_i32 = arith.constant 8 : i32
    %33 = tpu.dynamic_rotate %32 by %c8_i32 dim 1 : vector<8x128xf32>, i32 -> vector<8x128xf32>
    %c8_i32_14 = arith.constant 8 : i32
    %34 = vector.broadcast %c8_i32_14 : i32 to vector<8x128xi32>
    %35 = arith.cmpi sge, %17, %34 : vector<8x128xi32>
    %36 = arith.select %35, %33, %32 : vector<8x128xi1>, vector<8x128xf32>
    %37 = arith.maximumf %32, %36 : vector<8x128xf32>
    %c127_i32 = arith.constant 127 : i32
    %38 = tpu.dynamic_rotate %37 by %c127_i32 dim 1 : vector<8x128xf32>, i32 -> vector<8x128xf32>
    %c15_i32_15 = arith.constant 15 : i32
    %39 = vector.broadcast %c15_i32_15 : i32 to vector<8x128xi32>
    %40 = arith.cmpi slt, %17, %39 : vector<8x128xi32>
    %41 = arith.select %40, %38, %37 : vector<8x128xi1>, vector<8x128xf32>
    %42 = arith.maximumf %37, %41 : vector<8x128xf32>
    %c126_i32 = arith.constant 126 : i32
    %43 = tpu.dynamic_rotate %42 by %c126_i32 dim 1 : vector<8x128xf32>, i32 -> vector<8x128xf32>
    %c14_i32 = arith.constant 14 : i32
    %44 = vector.broadcast %c14_i32 : i32 to vector<8x128xi32>
    %45 = arith.cmpi slt, %17, %44 : vector<8x128xi32>
    %46 = arith.select %45, %43, %42 : vector<8x128xi1>, vector<8x128xf32>
    %47 = arith.maximumf %42, %46 : vector<8x128xf32>
    %c124_i32 = arith.constant 124 : i32
    %48 = tpu.dynamic_rotate %47 by %c124_i32 dim 1 : vector<8x128xf32>, i32 -> vector<8x128xf32>
    %c12_i32 = arith.constant 12 : i32
    %49 = vector.broadcast %c12_i32 : i32 to vector<8x128xi32>
    %50 = arith.cmpi slt, %17, %49 : vector<8x128xi32>
    %51 = arith.select %50, %48, %47 : vector<8x128xi1>, vector<8x128xf32>
    %52 = arith.maximumf %47, %51 : vector<8x128xf32>
    %c120_i32 = arith.constant 120 : i32
    %53 = tpu.dynamic_rotate %52 by %c120_i32 dim 1 : vector<8x128xf32>, i32 -> vector<8x128xf32>
    %c8_i32_16 = arith.constant 8 : i32
    %54 = vector.broadcast %c8_i32_16 : i32 to vector<8x128xi32>
    %55 = arith.cmpi slt, %17, %54 : vector<8x128xi32>
    %56 = arith.select %55, %53, %52 : vector<8x128xi1>, vector<8x128xf32>
    %57 = arith.maximumf %52, %56 : vector<8x128xf32>
    %58 = arith.subf %14, %57 : vector<8x128xf32>
    %59 = math.exp %58 : vector<8x128xf32>
    %c1_i32_17 = arith.constant 1 : i32
    %60 = tpu.dynamic_rotate %59 by %c1_i32_17 dim 1 : vector<8x128xf32>, i32 -> vector<8x128xf32>
    %c1_i32_18 = arith.constant 1 : i32
    %61 = vector.broadcast %c1_i32_18 : i32 to vector<8x128xi32>
    %62 = arith.cmpi sge, %17, %61 : vector<8x128xi32>
    %cst_19 = arith.constant 0.000000e+00 : f32
    %63 = vector.broadcast %cst_19 : f32 to vector<8x128xf32>
    %64 = arith.select %62, %60, %63 : vector<8x128xi1>, vector<8x128xf32>
    %65 = arith.addf %59, %64 : vector<8x128xf32>
    %c2_i32_20 = arith.constant 2 : i32
    %66 = tpu.dynamic_rotate %65 by %c2_i32_20 dim 1 : vector<8x128xf32>, i32 -> vector<8x128xf32>
    %c2_i32_21 = arith.constant 2 : i32
    %67 = vector.broadcast %c2_i32_21 : i32 to vector<8x128xi32>
    %68 = arith.cmpi sge, %17, %67 : vector<8x128xi32>
    %cst_22 = arith.constant 0.000000e+00 : f32
    %69 = vector.broadcast %cst_22 : f32 to vector<8x128xf32>
    %70 = arith.select %68, %66, %69 : vector<8x128xi1>, vector<8x128xf32>
    %71 = arith.addf %65, %70 : vector<8x128xf32>
    %c4_i32_23 = arith.constant 4 : i32
    %72 = tpu.dynamic_rotate %71 by %c4_i32_23 dim 1 : vector<8x128xf32>, i32 -> vector<8x128xf32>
    %c4_i32_24 = arith.constant 4 : i32
    %73 = vector.broadcast %c4_i32_24 : i32 to vector<8x128xi32>
    %74 = arith.cmpi sge, %17, %73 : vector<8x128xi32>
    %cst_25 = arith.constant 0.000000e+00 : f32
    %75 = vector.broadcast %cst_25 : f32 to vector<8x128xf32>
    %76 = arith.select %74, %72, %75 : vector<8x128xi1>, vector<8x128xf32>
    %77 = arith.addf %71, %76 : vector<8x128xf32>
    %c8_i32_26 = arith.constant 8 : i32
    %78 = tpu.dynamic_rotate %77 by %c8_i32_26 dim 1 : vector<8x128xf32>, i32 -> vector<8x128xf32>
    %c8_i32_27 = arith.constant 8 : i32
    %79 = vector.broadcast %c8_i32_27 : i32 to vector<8x128xi32>
    %80 = arith.cmpi sge, %17, %79 : vector<8x128xi32>
    %cst_28 = arith.constant 0.000000e+00 : f32
    %81 = vector.broadcast %cst_28 : f32 to vector<8x128xf32>
    %82 = arith.select %80, %78, %81 : vector<8x128xi1>, vector<8x128xf32>
    %83 = arith.addf %77, %82 : vector<8x128xf32>
    %c127_i32_29 = arith.constant 127 : i32
    %84 = tpu.dynamic_rotate %83 by %c127_i32_29 dim 1 : vector<8x128xf32>, i32 -> vector<8x128xf32>
    %c15_i32_30 = arith.constant 15 : i32
    %85 = vector.broadcast %c15_i32_30 : i32 to vector<8x128xi32>
    %86 = arith.cmpi slt, %17, %85 : vector<8x128xi32>
    %87 = arith.select %86, %84, %83 : vector<8x128xi1>, vector<8x128xf32>
    %88 = arith.maximumf %83, %87 : vector<8x128xf32>
    %c126_i32_31 = arith.constant 126 : i32
    %89 = tpu.dynamic_rotate %88 by %c126_i32_31 dim 1 : vector<8x128xf32>, i32 -> vector<8x128xf32>
    %c14_i32_32 = arith.constant 14 : i32
    %90 = vector.broadcast %c14_i32_32 : i32 to vector<8x128xi32>
    %91 = arith.cmpi slt, %17, %90 : vector<8x128xi32>
    %92 = arith.select %91, %89, %88 : vector<8x128xi1>, vector<8x128xf32>
    %93 = arith.maximumf %88, %92 : vector<8x128xf32>
    %c124_i32_33 = arith.constant 124 : i32
    %94 = tpu.dynamic_rotate %93 by %c124_i32_33 dim 1 : vector<8x128xf32>, i32 -> vector<8x128xf32>
    %c12_i32_34 = arith.constant 12 : i32
    %95 = vector.broadcast %c12_i32_34 : i32 to vector<8x128xi32>
    %96 = arith.cmpi slt, %17, %95 : vector<8x128xi32>
    %97 = arith.select %96, %94, %93 : vector<8x128xi1>, vector<8x128xf32>
    %98 = arith.maximumf %93, %97 : vector<8x128xf32>
    %c120_i32_35 = arith.constant 120 : i32
    %99 = tpu.dynamic_rotate %98 by %c120_i32_35 dim 1 : vector<8x128xf32>, i32 -> vector<8x128xf32>
    %c8_i32_36 = arith.constant 8 : i32
    %100 = vector.broadcast %c8_i32_36 : i32 to vector<8x128xi32>
    %101 = arith.cmpi slt, %17, %100 : vector<8x128xi32>
    %102 = arith.select %101, %99, %98 : vector<8x128xi1>, vector<8x128xf32>
    %103 = arith.maximumf %98, %102 : vector<8x128xf32>
    %104 = tpu.reciprocal %103 {approx = true} : vector<8x128xf32> -> vector<8x128xf32>
    %105 = arith.mulf %59, %104 : vector<8x128xf32>
    %c0_37 = arith.constant 0 : index
    %c0_38 = arith.constant 0 : index
    %106 = vector.load %arg6[%c0_37, %c0_38] : memref<8x8xf32, #tpu.memory_space<vmem>>, vector<8x8xf32>
    %c0_39 = arith.constant 0 : index
    %c0_40 = arith.constant 0 : index
    %107 = vector.load %arg7[%c0_39, %c0_40] : memref<8x128xf32, #tpu.memory_space<vmem>>, vector<8x128xf32>
    %cst_41 = arith.constant dense<0.000000e+00> : vector<8x128xf32>
    %108 = tpu.matmul %106, %107, %cst_41 {dimension_numbers = #tpu.dot_dimension_numbers<[1], [0], [0], [1], [0, 0, 1, 1], [], []>} : vector<8x8xf32>, vector<8x128xf32>, vector<8x128xf32> -> vector<8x128xf32>
    %109 = arith.mulf %108, %103 : vector<8x128xf32>
    %c15_i32_42 = arith.constant 15 : i32
    %110 = vector.broadcast %c15_i32_42 : i32 to vector<8x128xi32>
    %111 = arith.cmpi eq, %17, %110 : vector<8x128xi32>
    %112 = arith.cmpf ogt, %83, %109 : vector<8x128xf32>
    %113 = arith.ori %112, %111 : vector<8x128xi1>
    %114 = arith.extui %113 : vector<8x128xi1> to vector<8x128xi32>
    %115 = arith.sitofp %114 : vector<8x128xi32> to vector<8x128xf32>
    %c1_i32_43 = arith.constant 1 : i32
    %116 = vector.broadcast %c1_i32_43 : i32 to vector<8x128xi32>
    %117 = arith.cmpi sge, %17, %116 : vector<8x128xi32>
    %c1_i32_44 = arith.constant 1 : i32
    %118 = tpu.dynamic_rotate %115 by %c1_i32_44 dim 1 : vector<8x128xf32>, i32 -> vector<8x128xf32>
    %cst_45 = arith.constant 0.000000e+00 : f32
    %119 = vector.broadcast %cst_45 : f32 to vector<8x128xf32>
    %120 = arith.select %117, %118, %119 : vector<8x128xi1>, vector<8x128xf32>
    %121 = arith.subf %115, %120 : vector<8x128xf32>
    %122 = arith.truncf %121 : vector<8x128xf32> to vector<8x128xbf16>
    %c0_46 = arith.constant 0 : index
    %c0_47 = arith.constant 0 : index
    %123 = vector.load %arg8[%c0_46, %c0_47] : memref<8x128xbf16, #tpu.memory_space<vmem>>, vector<8x128xbf16>
    tpu.vector_store %arg8[%c0_46, %c0_47], %122 {strides = array<i32>} : memref<8x128xbf16, #tpu.memory_space<vmem>>, vector<8x128xbf16>,
    %c0_48 = arith.constant 0 : index
    %c0_49 = arith.constant 0 : index
    %124 = vector.load %arg9[%c0_48, %c0_49] : memref<8x128xf32, #tpu.memory_space<vmem>>, vector<8x128xf32>
    tpu.vector_store %arg9[%c0_48, %c0_49], %105 {strides = array<i32>} : memref<8x128xf32, #tpu.memory_space<vmem>>, vector<8x128xf32>,
    return
  }
  func.func @transform_0(%arg0: i32) -> (i32, i32) {
    %c0_i32 = arith.constant 0 : i32
    %c0_i32_0 = arith.constant 0 : i32
    return %arg0, %c0_i32 : i32, i32
  }
  func.func @transform_1(%arg0: i32) -> (i32, i32) {
    %c0_i32 = arith.constant 0 : i32
    %c0_i32_0 = arith.constant 0 : i32
    %c0_i32_1 = arith.constant 0 : i32
    return %c0_i32, %c0_i32_0 : i32, i32
  }
  func.func @transform_2(%arg0: i32) -> (i32, i32) {
    %c0_i32 = arith.constant 0 : i32
    %c0_i32_0 = arith.constant 0 : i32
    %c0_i32_1 = arith.constant 0 : i32
    return %c0_i32, %c0_i32_0 : i32, i32
  }
  func.func @transform_3(%arg0: i32) -> (i32, i32) {
    %c0_i32 = arith.constant 0 : i32
    %c0_i32_0 = arith.constant 0 : i32
    %c0_i32_1 = arith.constant 0 : i32
    return %c0_i32, %c0_i32_0 : i32, i32
  }
  func.func @transform_4(%arg0: i32) -> (i32, i32) {
    %c0_i32 = arith.constant 0 : i32
    %c0_i32_0 = arith.constant 0 : i32
    %c0_i32_1 = arith.constant 0 : i32
    return %c0_i32, %c0_i32_0 : i32, i32
  }
  func.func @transform_5(%arg0: i32) -> (i32, i32) {
    %c0_i32 = arith.constant 0 : i32
    %c0_i32_0 = arith.constant 0 : i32
    return %arg0, %c0_i32 : i32, i32
  }
  func.func @transform_6(%arg0: i32) -> (i32, i32) {
    %c0_i32 = arith.constant 0 : i32
    %c0_i32_0 = arith.constant 0 : i32
    %c0_i32_1 = arith.constant 0 : i32
    return %c0_i32, %c0_i32_0 : i32, i32
  }
  func.func @transform_7(%arg0: i32) -> (i32, i32) {
    %c0_i32 = arith.constant 0 : i32
    %c0_i32_0 = arith.constant 0 : i32
    return %arg0, %c0_i32 : i32, i32
  }
  func.func @transform_8(%arg0: i32) -> (i32, i32) {
    %c0_i32 = arith.constant 0 : i32
    %c0_i32_0 = arith.constant 0 : i32
    return %arg0, %c0_i32 : i32, i32
  }
}

</mosaic_0001>

<bundles_post_ra>
// kernel: tpu_custom_call.1
= control target key start
LH: loop header
LB: loop body
LE: loop exit
PB: predicated region body
PF: predicated region fallthrough
CT: control target
= control target key end

     0   :  { %s1278_s0 = inlined_call_operand.vmem [shape: f32[16,32], index: 0, kind: input, shape index: {}]   ;;  %s1279_s1 = inlined_call_operand.hbm [shape: bf16[32,32], index: 1, kind: input, shape index: {}]   ;;  %s1280_s2 = inlined_call_operand.vmem [shape: f32[1,32], index: 2, kind: input, shape index: {}]   ;;  %s1281_s3 = inlined_call_operand.hbm [shape: bf16[32,128], index: 3, kind: input, shape index: {}]   ;;  %s1282_s4 = inlined_call_operand.vmem [shape: f32[1,128], index: 4, kind: input, shape index: {}]   ;;  %s1283_s5 = inlined_call_operand.vmem [shape: f32[16,8], index: 5, kind: input, shape index: {}]   ;;  %s1284_s6 = inlined_call_operand.vmem [shape: f32[8,128], index: 6, kind: input, shape index: {}]   ;;  %s1285_s7 = inlined_call_operand.hbm [shape: bf16[16,128], index: 7, kind: output, shape index: {0}]   ;;  %s1286_s8 = inlined_call_operand.hbm [shape: f32[16,128], index: 8, kind: output, shape index: {1}]  }
   0x1   :  { %1287 = sst [smem:[#allocation14_spill]] %s1278_s0 }
   0x2   :  { %1288 = sst [smem:[#allocation15_spill]] %s1279_s1 }
   0x3   :  { %14 = vsyncpa [#allocation3], 0 }
   0x4   :  { %15 = vsyncpa [#allocation6], 0 }
   0x5   :  { %16 = vsyncpa [#allocation4], 0 }
   0x6   :  { %18 = vsyncpa [#allocation4 + $0x1], 0 }
   0x7   :  { %19 = vsyncpa [#allocation9], 0 }
   0x8   :  { %21 = vsyncpa [#allocation9 + $0x1], 0  ;;  %s1067_s27 = smov 0   ;;  %s1069_s28 = smov 0  }
   0x9   :  { %s1071_s29 = smov 0   ;;  %s1073_s30 = smov 0  }
   0xa LB: > { %s1088_s9 = sadd.s32 4294967295, %s1007_s30   ;;  %s721_s10 = sadd.s32 4294967294, %s1007_s30   ;;  %s1007_s30 = sphi %s1073_s30, %s1297_s30   ;;  %s1003_s29 = sphi %s1071_s29, %s1296_s29   ;;  %s999_s28 = sphi %s1069_s28, %s1295_s28   ;;  %s995_s27 = sphi %s1067_s27, %s1294_s27  }
   0xb   : > { %s1092_s11 = sadd.s32 1, %s1007_s30   ;;  %s191_s12 = sadd.s32 1, %s1003_s29 }
   0xc   : > { %s188_s13 = ssub.s32 %s1007_s30, %s1092_s11  ;;  %p201_p0 = scmp.ne.s32.totalorder %s1003_s29, %s999_s28 }
   0xd   : > { %p189_p1 = scmp.eq.s32.totalorder %s188_s13, 0  ;;  %p202_p2 = scmp.eq.s32.totalorder %s1088_s9, 1 }
   0xe   : > { %p207_p3 = scmp.ne.s32.totalorder %s999_s28, %s995_s27  ;;  %p208_p4 = scmp.eq.s32.totalorder %s721_s10, 1 }
   0xf   : > { %s1103_s14 = scalar_select %p189_p1, %s1003_s29, %s191_s12  }
  0x10   : > { %p1105_p5 = por %p202_p2, %p201_p0  ;;  %p1109_p6 = por %p208_p4, %p207_p3 }
  0x11   : > { %p722_p7 = scmp.ge.s32.totalorder %s1007_s30, 1  ;;  %p241_p8 = scmp.lt.s32.totalorder %s1007_s30, 3 }
  0x12   : > { %p789_p9 = scmp.eq.s32.totalorder %s1088_s9, 0  ;;  %s1292_s1 = sld [smem:[#allocation15_spill]] }
  0x13   : > { %p1116_p10 = pnand %p722_p7, %p241_p8  ;;  %s1009_s21 = smov [#allocation2]  }
  0x14   : > { %s254_s22 = sshll.u32 %s1009_s21, 4  ;;  %s269_s25 = sshll.u32 %s1281_s3, 4  ;;  %s255_s22 = int_to_ptr.vmem [resolvable:$true] %s254_s22  ;;  %s270_s25 = int_to_ptr.hbm [resolvable:$true] %s269_s25 }
  0x15   : > { %p775_p11 = pneg %p1116_p10  ;;  %s1010_s26 = smov 64  }
  0x16   : > { %s1011_s10 = smov 4   ;;  %s1012_s12 = smov [#allocation5]  }
  0x17   : > { %p776_p12 = pnand %p789_p9, %p775_p11  ;;  %s271_s13 = sshll.u32 %s1012_s12, 4  ;;  %s272_s13 = int_to_ptr.vmem [resolvable:$true] %s271_s13 }
  0x18   : > { %s252_s20 = sshll.u32 %s1292_s1, 4  ;;  %307 = sbr.rel (%p1116_p10) target bundleno = 2209 (0x8a1), region = 48  ;;  %s253_s20 = int_to_ptr.hbm [resolvable:$true] %s252_s20 }
  0x19   : > { %778 = dma.hbm_to_vmem [thread:$0]  (!%p776_p12), %s253_s20, 256, %s255_s22, [#allocation3], %s1010_s26, %s1010_s26, %s1011_s10  }
  0x1a   : > { %781 = dma.hbm_to_vmem [thread:$0]  (!%p776_p12), %s270_s25, 256, %s272_s13, [#allocation6], %s1010_s26, %s1010_s26, %s1011_s10  }
  0x1d   : > { %978 = dma.done.wait (%p789_p9), [#allocation3], 256  }
  0x1e   : > { %980 = vsyncadd (%p789_p9), [#allocation3], 4294967040 }
  0x1f   : > { %982 = dma.done.wait (%p789_p9), [#allocation6], 256  }
  0x20   : > { %984 = vsyncadd (%p789_p9), [#allocation6], 4294967040  ;;  %p355_p13 = scmp.lt.s32.totalorder %s1088_s9, 1  ;;  %s1293_s0 = sld [smem:[#allocation14_spill]]  ;;  %v760_v0 = vld [vmem:[#allocation2 + $0x8] sm:$0xff]  ;;  %v759_v1 = vld [vmem:[#allocation2] sm:$0xff]  ;;  %v441_v16 = vlaneseq }
  0x21   : > { %396 = vmatpush.bf16.msra.mxu0 %v760_v0  ;;  %vm386_vm0 = vcmask 261120   ;;  %v762_v4 = vld [vmem:[#allocation5 + $0x8] sm:$0xff]  ;;  %v761_v5 = vld [vmem:[#allocation5] sm:$0xff]  ;;  %v839_v6 = vld [vmem:[%s1280_s2] ss:$0 sm:$0xff]  ;;  %s1013_s26 = smov 1  }
  0x22   : > { %s1142_s18 = scalar_select %p355_p13, %s1088_s9, 1  ;;  %434 = vmatpush.bf16.msra.mxu1 %v762_v4  ;;  %v840_v12 = vld [vmem:[%s1282_s4] ss:$0 sm:$0xff]  ;;  %v442_v17 = vand.u32 127, %v441_v16  ;;  %vm523_vm9 = vcmask 64512  }
  0x23   : > { %s1014_s10 = smov 2   ;;  %s1015_s12 = smov 4   ;;  %v522_v61 = vld [vmem:[%s1284_s6] sm:$0xff] }
  0x24   : > { %s731_s17 = sshll.u32 %s1142_s18, 3  ;;  %v1157_v18 = vand.u32 15, %v442_v17  ;;  %s1016_s13 = smov 8   ;;  %542 = vmatpush.msra.mxu2 %v522_v61 }
  0x25   : > { %397 = vmatpush.bf16.msra.mxu0 %v759_v1  ;;  %s1017_s19 = smov 127   ;;  %s1018_s20 = smov 126  }
  0x26   : > { %s358_s21 = scalar_lea.vmem %s1293_s0, %s731_s17  ;;  %435 = vmatpush.bf16.msra.mxu1 %v761_v5  ;;  %vm446_vm1 = vcmp.ge.s32.totalorder %v1157_v18, 1  ;;  %vm451_vm2 = vcmp.ge.s32.totalorder %v1157_v18, 2  ;;  %vm456_vm3 = vcmp.ge.s32.totalorder %v1157_v18, 4  ;;  %vm461_vm4 = vcmp.ge.s32.totalorder %v1157_v18, 8  ;;  %s1020_s22 = smov 120  }
  0x27   : > { %v364_v2 = vld [vmem:[%s358_s21] sm:$0xff]  ;;  %vm466_vm5 = vcmp.lt.s32.totalorder %v1157_v18, 15  ;;  %vm471_vm6 = vcmp.lt.s32.totalorder %v1157_v18, 14  ;;  %s1019_s21 = smov 124   ;;  %vm476_vm7 = vcmp.lt.s32.totalorder %v1157_v18, 12  ;;  %vm481_vm8 = vcmp.lt.s32.totalorder %v1157_v18, 8  ;;  %s362_s25 = scalar_lea.vmem %s1283_s5, %s731_s17 }
  0x28   : > { %v365_v3 = vpack.c.bf16 %v364_v2, %v364_v2  ;;  %v521_v62 = vld [vmem:[%s362_s25] sm:$0xff]  ;;  %s1223_s18 = sand.u32 1, %s999_s28   ;;  %s756_s17 = sshll.u32 %s1088_s9, 3  ;;  %vm548_vm10 = vcmp.eq.s32.totalorder %v1157_v18, 15 }
  0x29   : > { %751 = vmatmul.msk.f32.vlgmr.msra.gmra.mxu2 %vm523_vm9, %v521_v62  ;;  %s566_s25 = scalar_lea.sflag [#allocation9], %s1223_s18 }
  0x2a   : > { %741 = vmatmul.msk.bf16.vlgmr.msra.gmra.mxu0 %vm386_vm0, %v365_v3 }
  0xa7   : > { %v399_v7 = vpop.f32.mrf.mxu0 }
  0xa8   : > { %v400_v8 = vadd.f32 %v839_v6, %v399_v7 }
  0xaa   : > { %v403_v9 = vmax.f32 %v400_v8, 0.0 }
  0xac   : > { %v404_v10 = vpack.c.bf16 %v403_v9, %v403_v9  ;;  %v544_v7 = vpop.f32.mrf.mxu2 }
  0xae   : > { %750 = vmatmul.msk.bf16.vlgmr.msra.gmra.mxu1 %vm386_vm0, %v404_v10  ;;  %v1021_v10 = vmov 0.0  }
  0xaf   : > { %v401_v11 = vpop.f32.mrf.mxu0 }
 0x12b   : > { %v437_v13 = vpop.f32.mrf.mxu1 }
 0x12c   : > { %v438_v14 = vadd.f32 %v840_v12, %v437_v13 }
 0x12e   : > { %444 = vrot.lane.b32.xlu0 %v438_v14, %s1013_s26 }
 0x133   : > { %v439_v15 = vpop.f32.mrf.mxu1 }
 0x1a0   : > { %v445_v19 = vpop.permute.xlu0 %444 }
 0x1a1   : > { %v447_v20 = vsel %vm446_vm1, %v445_v19, %v438_v14 }
 0x1a2   : > { %v448_v21 = vmax.f32 %v438_v14, %v447_v20 }
 0x1a4   : > { %449 = vrot.lane.b32.xlu0 %v448_v21, %s1014_s10 }
 0x216   : > { %v450_v22 = vpop.permute.xlu0 %449 }
 0x217   : > { %v452_v23 = vsel %vm451_vm2, %v450_v22, %v448_v21 }
 0x218   : > { %v453_v24 = vmax.f32 %v448_v21, %v452_v23 }
 0x21a   : > { %454 = vrot.lane.b32.xlu1 %v453_v24, %s1015_s12 }
 0x28c   : > { %v455_v25 = vpop.permute.xlu1 %454 }
 0x28d   : > { %v457_v26 = vsel %vm456_vm3, %v455_v25, %v453_v24 }
 0x28e   : > { %v458_v27 = vmax.f32 %v453_v24, %v457_v26 }
 0x290   : > { %459 = vrot.lane.b32.xlu1 %v458_v27, %s1016_s13 }
 0x302   : > { %v460_v28 = vpop.permute.xlu1 %459 }
 0x303   : > { %v462_v29 = vsel %vm461_vm4, %v460_v28, %v458_v27 }
 0x304   : > { %v463_v30 = vmax.f32 %v458_v27, %v462_v29 }
 0x306   : > { %464 = vrot.lane.b32.xlu2 %v463_v30, %s1017_s19 }
 0x360   : > { %v465_v31 = vpop.permute.xlu2 %464 }
 0x361   : > { %v467_v32 = vsel %vm466_vm5, %v465_v31, %v463_v30 }
 0x362   : > { %v468_v33 = vmax.f32 %v463_v30, %v467_v32 }
 0x364   : > { %469 = vrot.lane.b32.xlu2 %v468_v33, %s1018_s20 }
 0x3be   : > { %v470_v34 = vpop.permute.xlu2 %469 }
 0x3bf   : > { %v472_v35 = vsel %vm471_vm6, %v470_v34, %v468_v33 }
 0x3c0   : > { %v473_v36 = vmax.f32 %v468_v33, %v472_v35 }
 0x3c2   : > { %474 = vrot.lane.b32.xlu0 %v473_v36, %s1019_s21 }
 0x434   : > { %v475_v37 = vpop.permute.xlu0 %474 }
 0x435   : > { %v477_v38 = vsel %vm476_vm7, %v475_v37, %v473_v36 }
 0x436   : > { %v478_v39 = vmax.f32 %v473_v36, %v477_v38 }
 0x438   : > { %479 = vrot.lane.b32.xlu1 %v478_v39, %s1020_s22 }
 0x4aa   : > { %v480_v40 = vpop.permute.xlu1 %479 }
 0x4ab   : > { %v482_v41 = vsel %vm481_vm8, %v480_v40, %v478_v39 }
 0x4ac   : > { %v483_v42 = vmax.f32 %v478_v39, %v482_v41 }
 0x4ae   : > { %v484_v43 = vsub.f32 %v438_v14, %v483_v42 }
 0x4b0   : > { %v485_v44 = vmul.f32 1.442695, %v484_v43 }
 0x4b2   : > { %841 = vpow2.f32 %v485_v44 }
 0x4b8   : > { %v842_v45 = vpop.eup %841 }
 0x4b9   : > { %487 = vrot.lane.b32.xlu2 %v842_v45, %s1013_s26 }
 0x513   : > { %v488_v46 = vpop.permute.xlu2 %487 }
 0x514   : > { %v489_v47 = vsel %vm446_vm1, %v488_v46, 0.0 }
 0x515   : > { %v490_v48 = vadd.f32 %v842_v45, %v489_v47 }
 0x517   : > { %491 = vrot.lane.b32.xlu0 %v490_v48, %s1014_s10 }
 0x589   : > { %v492_v49 = vpop.permute.xlu0 %491 }
 0x58a   : > { %v493_v50 = vsel %vm451_vm2, %v492_v49, 0.0 }
 0x58b   : > { %v494_v51 = vadd.f32 %v493_v50, %v490_v48 }
 0x58d   : > { %495 = vrot.lane.b32.xlu1 %v494_v51, %s1015_s12 }
 0x5ff   : > { %v496_v52 = vpop.permute.xlu1 %495 }
 0x600   : > { %v497_v53 = vsel %vm456_vm3, %v496_v52, 0.0 }
 0x601   : > { %v498_v54 = vadd.f32 %v497_v53, %v494_v51 }
 0x603   : > { %499 = vrot.lane.b32.xlu2 %v498_v54, %s1016_s13  ;;  %s730_s13 = sshll.u32 %s1223_s18, 3 }
 0x65d   : > { %v500_v55 = vpop.permute.xlu2 %499 }
 0x65e   : > { %v501_v56 = vsel %vm461_vm4, %v500_v55, 0.0 }
 0x65f   : > { %v502_v57 = vadd.f32 %v501_v56, %v498_v54 }
 0x661   : > { %503 = vrot.lane.b32.xlu0 %v502_v57, %s1017_s19 }
 0x6d3   : > { %v504_v58 = vpop.permute.xlu0 %503 }
 0x6d4   : > { %v505_v59 = vsel %vm466_vm5, %v504_v58, %v502_v57 }
 0x6d5   : > { %v506_v60 = vmax.f32 %v502_v57, %v505_v59 }
 0x6d7   : > { %507 = vrot.lane.b32.xlu1 %v506_v60, %s1018_s20 }
 0x749   : > { %v508_v63 = vpop.permute.xlu1 %507 }
 0x74a   : > { %v509_v0 = vsel %vm471_vm6, %v508_v63, %v506_v60 }
 0x74b   : > { %v510_v1 = vmax.f32 %v506_v60, %v509_v0 }
 0x74d   : > { %511 = vrot.lane.b32.xlu2 %v510_v1, %s1019_s21  ;;  %s590_s21 = scalar_lea.hbm %s1286_s8, %s756_s17 }
 0x74e   : > { %s594_s24 = sshll.u32 %s590_s21, 4  ;;  %s595_s24 = int_to_ptr.hbm [resolvable:$true] %s594_s24 }
 0x74f   : > { %s919_s10 = sshra.s32 %s595_s24, 4  ;;  %s920_s10 = int_to_ptr.hbm [resolvable:$true] %s919_s10 }
 0x750   : > { %s921_s12 = scalar_lea.hbm %s920_s10, 8  ;;  %p926_p3 = scmp.lt.s32.totalorder %s920_s10, %s1286_s8 }
 0x751   : > { %p922_p0 = scmp.ne.s32.totalorder %s920_s10, %s921_s12 }
 0x753   : > { %p923_p1 = pnand %p922_p0, %p1105_p5 }
 0x755   : > { %p924_p2 = pneg %p923_p1 }
 0x7a7   : > { %v512_v2 = vpop.permute.xlu2 %511 }
 0x7a8   : > { %v513_v3 = vsel %vm476_vm7, %v512_v2, %v510_v1 }
 0x7a9   : > { %v514_v4 = vmax.f32 %v510_v1, %v513_v3 }
 0x7ab   : > { %515 = vrot.lane.b32.xlu0 %v514_v4, %s1020_s22  ;;  %s354_s22 = scalar_lea.vmem [#allocation8], %s730_s13  ;;  %s925_s13 = scalar_lea.hbm %s1286_s8, 16 }
 0x7ac   : > { %s592_s23 = sshll.u32 %s354_s22, 4  ;;  %p927_p4 = scmp.lt.s32.totalorder %s925_s13, %s921_s12  ;;  %s593_s23 = int_to_ptr.vmem [resolvable:$true] %s592_s23 }
 0x7ae   : > { %p928_p7 = por %p927_p4, %p926_p3 }
 0x7b0   : > { %p929_p8 = pnand %p928_p7, %p924_p2 }
 0x81d   : > { %v516_v5 = vpop.permute.xlu0 %515 }
 0x81e   : > { %v517_v6 = vsel %vm481_vm8, %v516_v5, %v514_v4 }
 0x81f   : > { %v518_v8 = vmax.f32 %v514_v4, %v517_v6 }
 0x821   : > { %843 = vrcp.f32 %v518_v8  ;;  %v547_v9 = vmul.f32 %v544_v7, %v518_v8 }
 0x823   : > { %vm549_vm11 = vcmp.gt.f32.partialorder %v502_v57, %v547_v9 }
 0x824   : > { %vm550_vm12 = vmor %vm549_vm11, %vm548_vm10 }
 0x825   : > { %v752_v11 = vsel %vm550_vm12, 1.0, %v1021_v10 }
 0x826   : > { %553 = vrot.lane.b32.xlu1 %v752_v11, %s1013_s26 }
 0x827   : > { %v844_v12 = vpop.eup %843 }
 0x828   : > { %v520_v13 = vmul.f32 %v844_v12, %v842_v45 }
 0x82a   : > { %559 = vst [vmem:[%s354_s22] sm:$0xff] %v520_v13 }
 0x82b   : > { %932 = shalt.err (!%p929_p8)
}
 0x82c   : > { %772 = dma.vmem_to_hbm [thread:$0]  (%p1105_p5), %s593_s23, 128, %s595_s24, %s566_s25  }
 0x82d   : > { %s729_s26 = sshll.u32 %s1223_s18, 2  ;;  %s755_s22 = sshll.u32 %s1088_s9, 2 }
 0x82e   : > { %s576_s17 = scalar_lea.hbm %s1285_s7, %s755_s22  ;;  %s347_s10 = scalar_lea.vmem [#allocation7], %s729_s26 }
 0x82f   : > { %s578_s12 = sshll.u32 %s347_s10, 4  ;;  %s580_s19 = sshll.u32 %s576_s17, 4  ;;  %s579_s12 = int_to_ptr.vmem [resolvable:$true] %s578_s12  ;;  %s581_s19 = int_to_ptr.hbm [resolvable:$true] %s580_s19 }
 0x830   : > { %s561_s23 = scalar_lea.sflag [#allocation4], %s1223_s18  ;;  %s947_s24 = sshra.s32 %s581_s19, 4  ;;  %s948_s24 = int_to_ptr.hbm [resolvable:$true] %s947_s24 }
 0x831   : > { %s949_s9 = scalar_lea.hbm %s948_s24, 4  ;;  %s953_s25 = scalar_lea.hbm %s1285_s7, 8 }
 0x832   : > { %p950_p9 = scmp.ne.s32.totalorder %s948_s24, %s949_s9  ;;  %p954_p12 = scmp.lt.s32.totalorder %s948_s24, %s1285_s7 }
 0x833   : > { %p955_p13 = scmp.lt.s32.totalorder %s953_s25, %s949_s9 }
 0x834   : > { %p951_p10 = pnand %p950_p9, %p1105_p5 }
 0x835   : > { %p956_p0 = por %p955_p13, %p954_p12 }
 0x836   : > { %p952_p11 = pneg %p951_p10 }
 0x838   : > { %p957_p1 = pnand %p956_p0, %p952_p11 }
 0x898   : > { %v554_v14 = vpop.permute.xlu1 %553 }
 0x899   : > { %v555_v15 = vsel %vm446_vm1, %v554_v14, 0.0 }
 0x89a   : > { %v556_v16 = vsub.f32 %v752_v11, %v555_v15 }
 0x89c   : > { %v557_v17 = vpack.c.bf16 %v556_v16, %v556_v16 }
 0x89e   : > { %558 = vst [vmem:[%s347_s10] sm:$0xf] %v557_v17 }
 0x89f   : > { %960 = shalt.err (!%p957_p1)
}
 0x8a0   : > { %771 = dma.vmem_to_hbm [thread:$0]  (%p1105_p5), %s579_s12, 64, %s581_s19, %s561_s23  }
 0x8a1 PF: > { %p793_p2 = scmp.ge.s32.totalorder %s1007_s30, 2  ;;  %s606_s18 = sand.u32 1, %s995_s27  }
 0x8a2   : > { %s607_s21 = scalar_lea.sflag [#allocation4], %s606_s18 }
 0x8a3   : > { %p783_p3 = pnand %p793_p2, %p1109_p6 }
 0x8a5   : > { %p784_p4 = pneg %p783_p3 }
 0x8a7   : > { %986 = dma.done.wait (%p784_p4), %s607_s21, 64  }
 0x8a8   : > { %988 = vsyncadd (%p784_p4), %s607_s21, 4294967232  ;;  %s617_s26 = scalar_lea.sflag [#allocation9], %s606_s18 }
 0x8a9   : > { %990 = dma.done.wait (%p784_p4), %s617_s26, 128  }
 0x8aa   : > { %992 = vsyncadd (%p784_p4), %s617_s26, 4294967168  ;;  %p24_p5 = scmp.ge.s32.totalorder %s1092_s11, 4   ;;  %s1294_s27 = smov %s999_s28 }
 0x8ab   : > { %s1295_s28 = smov %s1003_s29  ;;  %s1296_s29 = smov %s1103_s14 }
 0x8ac   : > { %s1297_s30 = smov %s1092_s11  ;;  %26 = sbr.rel (!%p24_p5) target bundleno = 10 (0xa), region = 112 }
 0x8b1   :  { %623 = vsyncpa [#allocation3], 1 }
 0x8b2   :  { %625 = vsyncpa [#allocation3 + $0x1], 1 }
 0x8b3   :  { %626 = vsyncpa [#allocation6], 1 }
 0x8b4   :  { %627 = vsyncpa [#allocation4], 1 }
 0x8b5   :  { %629 = vsyncpa [#allocation4 + $0x1], 1 }
 0x8b6   :  { %630 = vsyncpa [#allocation9], 1 }
 0x8b7   :  { %632 = vsyncpa [#allocation9 + $0x1], 1 }

// kernel: tpu_custom_call.1
= control target key start
LH: loop header
LB: loop body
LE: loop exit
PB: predicated region body
PF: predicated region fallthrough
CT: control target
= control target key end

     0   :  { %s1278_s0 = inlined_call_operand.vmem [shape: f32[16,32], index: 0, kind: input, shape index: {}]   ;;  %s1279_s1 = inlined_call_operand.hbm [shape: bf16[32,32], index: 1, kind: input, shape index: {}]   ;;  %s1280_s2 = inlined_call_operand.vmem [shape: f32[1,32], index: 2, kind: input, shape index: {}]   ;;  %s1281_s3 = inlined_call_operand.hbm [shape: bf16[32,128], index: 3, kind: input, shape index: {}]   ;;  %s1282_s4 = inlined_call_operand.vmem [shape: f32[1,128], index: 4, kind: input, shape index: {}]   ;;  %s1283_s5 = inlined_call_operand.vmem [shape: f32[16,8], index: 5, kind: input, shape index: {}]   ;;  %s1284_s6 = inlined_call_operand.vmem [shape: f32[8,128], index: 6, kind: input, shape index: {}]   ;;  %s1285_s7 = inlined_call_operand.hbm [shape: bf16[16,128], index: 7, kind: output, shape index: {0}]   ;;  %s1286_s8 = inlined_call_operand.hbm [shape: f32[16,128], index: 8, kind: output, shape index: {1}]  }
   0x1   :  { %1287 = sst [smem:[#allocation14_spill]] %s1278_s0 }
   0x2   :  { %1288 = sst [smem:[#allocation15_spill]] %s1279_s1 }
   0x3   :  { %14 = vsyncpa [#allocation3], 0 }
   0x4   :  { %15 = vsyncpa [#allocation6], 0 }
   0x5   :  { %16 = vsyncpa [#allocation4], 0 }
   0x6   :  { %18 = vsyncpa [#allocation4 + $0x1], 0 }
   0x7   :  { %19 = vsyncpa [#allocation9], 0 }
   0x8   :  { %21 = vsyncpa [#allocation9 + $0x1], 0  ;;  %s1067_s27 = smov 0   ;;  %s1069_s28 = smov 0  }
   0x9   :  { %s1071_s29 = smov 0   ;;  %s1073_s30 = smov 0  }
   0xa LB: > { %s1088_s9 = sadd.s32 4294967295, %s1007_s30   ;;  %s721_s10 = sadd.s32 4294967294, %s1007_s30   ;;  %s1007_s30 = sphi %s1073_s30, %s1297_s30   ;;  %s1003_s29 = sphi %s1071_s29, %s1296_s29   ;;  %s999_s28 = sphi %s1069_s28, %s1295_s28   ;;  %s995_s27 = sphi %s1067_s27, %s1294_s27  }
   0xb   : > { %s1092_s11 = sadd.s32 1, %s1007_s30   ;;  %s191_s12 = sadd.s32 1, %s1003_s29 }
   0xc   : > { %s188_s13 = ssub.s32 %s1007_s30, %s1092_s11  ;;  %p201_p0 = scmp.ne.s32.totalorder %s1003_s29, %s999_s28 }
   0xd   : > { %p189_p1 = scmp.eq.s32.totalorder %s188_s13, 0  ;;  %p202_p2 = scmp.eq.s32.totalorder %s1088_s9, 1 }
   0xe   : > { %p207_p3 = scmp.ne.s32.totalorder %s999_s28, %s995_s27  ;;  %p208_p4 = scmp.eq.s32.totalorder %s721_s10, 1 }
   0xf   : > { %s1103_s14 = scalar_select %p189_p1, %s1003_s29, %s191_s12  }
  0x10   : > { %p1105_p5 = por %p202_p2, %p201_p0  ;;  %p1109_p6 = por %p208_p4, %p207_p3 }
  0x11   : > { %p722_p7 = scmp.ge.s32.totalorder %s1007_s30, 1  ;;  %p241_p8 = scmp.lt.s32.totalorder %s1007_s30, 3 }
  0x12   : > { %p789_p9 = scmp.eq.s32.totalorder %s1088_s9, 0  ;;  %s1292_s1 = sld [smem:[#allocation15_spill]] }
  0x13   : > { %p1116_p10 = pnand %p722_p7, %p241_p8  ;;  %s1009_s21 = smov [#allocation2]  }
  0x14   : > { %s254_s22 = sshll.u32 %s1009_s21, 4  ;;  %s269_s25 = sshll.u32 %s1281_s3, 4  ;;  %s255_s22 = int_to_ptr.vmem [resolvable:$true] %s254_s22  ;;  %s270_s25 = int_to_ptr.hbm [resolvable:$true] %s269_s25 }
  0x15   : > { %p775_p11 = pneg %p1116_p10  ;;  %s1010_s26 = smov 64  }
  0x16   : > { %s1011_s10 = smov 4   ;;  %s1012_s12 = smov [#allocation5]  }
  0x17   : > { %p776_p12 = pnand %p789_p9, %p775_p11  ;;  %s271_s13 = sshll.u32 %s1012_s12, 4  ;;  %s272_s13 = int_to_ptr.vmem [resolvable:$true] %s271_s13 }
  0x18   : > { %s252_s20 = sshll.u32 %s1292_s1, 4  ;;  %307 = sbr.rel (%p1116_p10) target bundleno = 2209 (0x8a1), region = 48  ;;  %s253_s20 = int_to_ptr.hbm [resolvable:$true] %s252_s20 }
  0x19   : > { %778 = dma.hbm_to_vmem [thread:$0]  (!%p776_p12), %s253_s20, 256, %s255_s22, [#allocation3], %s1010_s26, %s1010_s26, %s1011_s10  }
  0x1a   : > { %781 = dma.hbm_to_vmem [thread:$0]  (!%p776_p12), %s270_s25, 256, %s272_s13, [#allocation6], %s1010_s26, %s1010_s26, %s1011_s10  }
  0x1d   : > { %978 = dma.done.wait (%p789_p9), [#allocation3], 256  }
  0x1e   : > { %980 = vsyncadd (%p789_p9), [#allocation3], 4294967040 }
  0x1f   : > { %982 = dma.done.wait (%p789_p9), [#allocation6], 256  }
  0x20   : > { %984 = vsyncadd (%p789_p9), [#allocation6], 4294967040  ;;  %p355_p13 = scmp.lt.s32.totalorder %s1088_s9, 1  ;;  %s1293_s0 = sld [smem:[#allocation14_spill]]  ;;  %v760_v0 = vld [vmem:[#allocation2 + $0x8] sm:$0xff]  ;;  %v759_v1 = vld [vmem:[#allocation2] sm:$0xff]  ;;  %v441_v16 = vlaneseq }
  0x21   : > { %396 = vmatpush.bf16.msra.mxu0 %v760_v0  ;;  %vm386_vm0 = vcmask 261120   ;;  %v762_v4 = vld [vmem:[#allocation5 + $0x8] sm:$0xff]  ;;  %v761_v5 = vld [vmem:[#allocation5] sm:$0xff]  ;;  %v839_v6 = vld [vmem:[%s1280_s2] ss:$0 sm:$0xff]  ;;  %s1013_s26 = smov 1  }
  0x22   : > { %s1142_s18 = scalar_select %p355_p13, %s1088_s9, 1  ;;  %434 = vmatpush.bf16.msra.mxu1 %v762_v4  ;;  %v840_v12 = vld [vmem:[%s1282_s4] ss:$0 sm:$0xff]  ;;  %v442_v17 = vand.u32 127, %v441_v16  ;;  %vm523_vm9 = vcmask 64512  }
  0x23   : > { %s1014_s10 = smov 2   ;;  %s1015_s12 = smov 4   ;;  %v522_v61 = vld [vmem:[%s1284_s6] sm:$0xff] }
  0x24   : > { %s731_s17 = sshll.u32 %s1142_s18, 3  ;;  %v1157_v18 = vand.u32 15, %v442_v17  ;;  %s1016_s13 = smov 8   ;;  %542 = vmatpush.msra.mxu2 %v522_v61 }
  0x25   : > { %397 = vmatpush.bf16.msra.mxu0 %v759_v1  ;;  %s1017_s19 = smov 127   ;;  %s1018_s20 = smov 126  }
  0x26   : > { %s358_s21 = scalar_lea.vmem %s1293_s0, %s731_s17  ;;  %435 = vmatpush.bf16.msra.mxu1 %v761_v5  ;;  %vm446_vm1 = vcmp.ge.s32.totalorder %v1157_v18, 1  ;;  %vm451_vm2 = vcmp.ge.s32.totalorder %v1157_v18, 2  ;;  %vm456_vm3 = vcmp.ge.s32.totalorder %v1157_v18, 4  ;;  %vm461_vm4 = vcmp.ge.s32.totalorder %v1157_v18, 8  ;;  %s1020_s22 = smov 120  }
  0x27   : > { %v364_v2 = vld [vmem:[%s358_s21] sm:$0xff]  ;;  %vm466_vm5 = vcmp.lt.s32.totalorder %v1157_v18, 15  ;;  %vm471_vm6 = vcmp.lt.s32.totalorder %v1157_v18, 14  ;;  %s1019_s21 = smov 124   ;;  %vm476_vm7 = vcmp.lt.s32.totalorder %v1157_v18, 12  ;;  %vm481_vm8 = vcmp.lt.s32.totalorder %v1157_v18, 8  ;;  %s362_s25 = scalar_lea.vmem %s1283_s5, %s731_s17 }
  0x28   : > { %v365_v3 = vpack.c.bf16 %v364_v2, %v364_v2  ;;  %v521_v62 = vld [vmem:[%s362_s25] sm:$0xff]  ;;  %s1223_s18 = sand.u32 1, %s999_s28   ;;  %s756_s17 = sshll.u32 %s1088_s9, 3  ;;  %vm548_vm10 = vcmp.eq.s32.totalorder %v1157_v18, 15 }
  0x29   : > { %751 = vmatmul.msk.f32.vlgmr.msra.gmra.mxu2 %vm523_vm9, %v521_v62  ;;  %s566_s25 = scalar_lea.sflag [#allocation9], %s1223_s18 }
  0x2a   : > { %741 = vmatmul.msk.bf16.vlgmr.msra.gmra.mxu0 %vm386_vm0, %v365_v3 }
  0xa7   : > { %v399_v7 = vpop.f32.mrf.mxu0 }
  0xa8   : > { %v400_v8 = vadd.f32 %v839_v6, %v399_v7 }
  0xaa   : > { %v403_v9 = vmax.f32 %v400_v8, 0.0 }
  0xac   : > { %v404_v10 = vpack.c.bf16 %v403_v9, %v403_v9  ;;  %v544_v7 = vpop.f32.mrf.mxu2 }
  0xae   : > { %750 = vmatmul.msk.bf16.vlgmr.msra.gmra.mxu1 %vm386_vm0, %v404_v10  ;;  %v1021_v10 = vmov 0.0  }
  0xaf   : > { %v401_v11 = vpop.f32.mrf.mxu0 }
 0x12b   : > { %v437_v13 = vpop.f32.mrf.mxu1 }
 0x12c   : > { %v438_v14 = vadd.f32 %v840_v12, %v437_v13 }
 0x12e   : > { %444 = vrot.lane.b32.xlu0 %v438_v14, %s1013_s26 }
 0x133   : > { %v439_v15 = vpop.f32.mrf.mxu1 }
 0x1a0   : > { %v445_v19 = vpop.permute.xlu0 %444 }
 0x1a1   : > { %v447_v20 = vsel %vm446_vm1, %v445_v19, %v438_v14 }
 0x1a2   : > { %v448_v21 = vmax.f32 %v438_v14, %v447_v20 }
 0x1a4   : > { %449 = vrot.lane.b32.xlu0 %v448_v21, %s1014_s10 }
 0x216   : > { %v450_v22 = vpop.permute.xlu0 %449 }
 0x217   : > { %v452_v23 = vsel %vm451_vm2, %v450_v22, %v448_v21 }
 0x218   : > { %v453_v24 = vmax.f32 %v448_v21, %v452_v23 }
 0x21a   : > { %454 = vrot.lane.b32.xlu1 %v453_v24, %s1015_s12 }
 0x28c   : > { %v455_v25 = vpop.permute.xlu1 %454 }
 0x28d   : > { %v457_v26 = vsel %vm456_vm3, %v455_v25, %v453_v24 }
 0x28e   : > { %v458_v27 = vmax.f32 %v453_v24, %v457_v26 }
 0x290   : > { %459 = vrot.lane.b32.xlu1 %v458_v27, %s1016_s13 }
 0x302   : > { %v460_v28 = vpop.permute.xlu1 %459 }
 0x303   : > { %v462_v29 = vsel %vm461_vm4, %v460_v28, %v458_v27 }
 0x304   : > { %v463_v30 = vmax.f32 %v458_v27, %v462_v29 }
 0x306   : > { %464 = vrot.lane.b32.xlu2 %v463_v30, %s1017_s19 }
 0x360   : > { %v465_v31 = vpop.permute.xlu2 %464 }
 0x361   : > { %v467_v32 = vsel %vm466_vm5, %v465_v31, %v463_v30 }
 0x362   : > { %v468_v33 = vmax.f32 %v463_v30, %v467_v32 }
 0x364   : > { %469 = vrot.lane.b32.xlu2 %v468_v33, %s1018_s20 }
 0x3be   : > { %v470_v34 = vpop.permute.xlu2 %469 }
 0x3bf   : > { %v472_v35 = vsel %vm471_vm6, %v470_v34, %v468_v33 }
 0x3c0   : > { %v473_v36 = vmax.f32 %v468_v33, %v472_v35 }
 0x3c2   : > { %474 = vrot.lane.b32.xlu0 %v473_v36, %s1019_s21 }
 0x434   : > { %v475_v37 = vpop.permute.xlu0 %474 }
 0x435   : > { %v477_v38 = vsel %vm476_vm7, %v475_v37, %v473_v36 }
 0x436   : > { %v478_v39 = vmax.f32 %v473_v36, %v477_v38 }
 0x438   : > { %479 = vrot.lane.b32.xlu1 %v478_v39, %s1020_s22 }
 0x4aa   : > { %v480_v40 = vpop.permute.xlu1 %479 }
 0x4ab   : > { %v482_v41 = vsel %vm481_vm8, %v480_v40, %v478_v39 }
 0x4ac   : > { %v483_v42 = vmax.f32 %v478_v39, %v482_v41 }
 0x4ae   : > { %v484_v43 = vsub.f32 %v438_v14, %v483_v42 }
 0x4b0   : > { %v485_v44 = vmul.f32 1.442695, %v484_v43 }
 0x4b2   : > { %841 = vpow2.f32 %v485_v44 }
 0x4b8   : > { %v842_v45 = vpop.eup %841 }
 0x4b9   : > { %487 = vrot.lane.b32.xlu2 %v842_v45, %s1013_s26 }
 0x513   : > { %v488_v46 = vpop.permute.xlu2 %487 }
 0x514   : > { %v489_v47 = vsel %vm446_vm1, %v488_v46, 0.0 }
 0x515   : > { %v490_v48 = vadd.f32 %v842_v45, %v489_v47 }
 0x517   : > { %491 = vrot.lane.b32.xlu0 %v490_v48, %s1014_s10 }
 0x589   : > { %v492_v49 = vpop.permute.xlu0 %491 }
 0x58a   : > { %v493_v50 = vsel %vm451_vm2, %v492_v49, 0.0 }
 0x58b   : > { %v494_v51 = vadd.f32 %v493_v50, %v490_v48 }
 0x58d   : > { %495 = vrot.lane.b32.xlu1 %v494_v51, %s1015_s12 }
 0x5ff   : > { %v496_v52 = vpop.permute.xlu1 %495 }
 0x600   : > { %v497_v53 = vsel %vm456_vm3, %v496_v52, 0.0 }
 0x601   : > { %v498_v54 = vadd.f32 %v497_v53, %v494_v51 }
 0x603   : > { %499 = vrot.lane.b32.xlu2 %v498_v54, %s1016_s13  ;;  %s730_s13 = sshll.u32 %s1223_s18, 3 }
 0x65d   : > { %v500_v55 = vpop.permute.xlu2 %499 }
 0x65e   : > { %v501_v56 = vsel %vm461_vm4, %v500_v55, 0.0 }
 0x65f   : > { %v502_v57 = vadd.f32 %v501_v56, %v498_v54 }
 0x661   : > { %503 = vrot.lane.b32.xlu0 %v502_v57, %s1017_s19 }
 0x6d3   : > { %v504_v58 = vpop.permute.xlu0 %503 }
 0x6d4   : > { %v505_v59 = vsel %vm466_vm5, %v504_v58, %v502_v57 }
 0x6d5   : > { %v506_v60 = vmax.f32 %v502_v57, %v505_v59 }
 0x6d7   : > { %507 = vrot.lane.b32.xlu1 %v506_v60, %s1018_s20 }
 0x749   : > { %v508_v63 = vpop.permute.xlu1 %507 }
 0x74a   : > { %v509_v0 = vsel %vm471_vm6, %v508_v63, %v506_v60 }
 0x74b   : > { %v510_v1 = vmax.f32 %v506_v60, %v509_v0 }
 0x74d   : > { %511 = vrot.lane.b32.xlu2 %v510_v1, %s1019_s21  ;;  %s590_s21 = scalar_lea.hbm %s1286_s8, %s756_s17 }
 0x74e   : > { %s594_s24 = sshll.u32 %s590_s21, 4  ;;  %s595_s24 = int_to_ptr.hbm [resolvable:$true] %s594_s24 }
 0x74f   : > { %s919_s10 = sshra.s32 %s595_s24, 4  ;;  %s920_s10 = int_to_ptr.hbm [resolvable:$true] %s919_s10 }
 0x750   : > { %s921_s12 = scalar_lea.hbm %s920_s10, 8  ;;  %p926_p3 = scmp.lt.s32.totalorder %s920_s10, %s1286_s8 }
 0x751   : > { %p922_p0 = scmp.ne.s32.totalorder %s920_s10, %s921_s12 }
 0x753   : > { %p923_p1 = pnand %p922_p0, %p1105_p5 }
 0x755   : > { %p924_p2 = pneg %p923_p1 }
 0x7a7   : > { %v512_v2 = vpop.permute.xlu2 %511 }
 0x7a8   : > { %v513_v3 = vsel %vm476_vm7, %v512_v2, %v510_v1 }
 0x7a9   : > { %v514_v4 = vmax.f32 %v510_v1, %v513_v3 }
 0x7ab   : > { %515 = vrot.lane.b32.xlu0 %v514_v4, %s1020_s22  ;;  %s354_s22 = scalar_lea.vmem [#allocation8], %s730_s13  ;;  %s925_s13 = scalar_lea.hbm %s1286_s8, 16 }
 0x7ac   : > { %s592_s23 = sshll.u32 %s354_s22, 4  ;;  %p927_p4 = scmp.lt.s32.totalorder %s925_s13, %s921_s12  ;;  %s593_s23 = int_to_ptr.vmem [resolvable:$true] %s592_s23 }
 0x7ae   : > { %p928_p7 = por %p927_p4, %p926_p3 }
 0x7b0   : > { %p929_p8 = pnand %p928_p7, %p924_p2 }
 0x81d   : > { %v516_v5 = vpop.permute.xlu0 %515 }
 0x81e   : > { %v517_v6 = vsel %vm481_vm8, %v516_v5, %v514_v4 }
 0x81f   : > { %v518_v8 = vmax.f32 %v514_v4, %v517_v6 }
 0x821   : > { %843 = vrcp.f32 %v518_v8  ;;  %v547_v9 = vmul.f32 %v544_v7, %v518_v8 }
 0x823   : > { %vm549_vm11 = vcmp.gt.f32.partialorder %v502_v57, %v547_v9 }
 0x824   : > { %vm550_vm12 = vmor %vm549_vm11, %vm548_vm10 }
 0x825   : > { %v752_v11 = vsel %vm550_vm12, 1.0, %v1021_v10 }
 0x826   : > { %553 = vrot.lane.b32.xlu1 %v752_v11, %s1013_s26 }
 0x827   : > { %v844_v12 = vpop.eup %843 }
 0x828   : > { %v520_v13 = vmul.f32 %v844_v12, %v842_v45 }
 0x82a   : > { %559 = vst [vmem:[%s354_s22] sm:$0xff] %v520_v13 }
 0x82b   : > { %932 = shalt.err (!%p929_p8)
}
 0x82c   : > { %772 = dma.vmem_to_hbm [thread:$0]  (%p1105_p5), %s593_s23, 128, %s595_s24, %s566_s25  }
 0x82d   : > { %s729_s26 = sshll.u32 %s1223_s18, 2  ;;  %s755_s22 = sshll.u32 %s1088_s9, 2 }
 0x82e   : > { %s576_s17 = scalar_lea.hbm %s1285_s7, %s755_s22  ;;  %s347_s10 = scalar_lea.vmem [#allocation7], %s729_s26 }
 0x82f   : > { %s578_s12 = sshll.u32 %s347_s10, 4  ;;  %s580_s19 = sshll.u32 %s576_s17, 4  ;;  %s579_s12 = int_to_ptr.vmem [resolvable:$true] %s578_s12  ;;  %s581_s19 = int_to_ptr.hbm [resolvable:$true] %s580_s19 }
 0x830   : > { %s561_s23 = scalar_lea.sflag [#allocation4], %s1223_s18  ;;  %s947_s24 = sshra.s32 %s581_s19, 4  ;;  %s948_s24 = int_to_ptr.hbm [resolvable:$true] %s947_s24 }
 0x831   : > { %s949_s9 = scalar_lea.hbm %s948_s24, 4  ;;  %s953_s25 = scalar_lea.hbm %s1285_s7, 8 }
 0x832   : > { %p950_p9 = scmp.ne.s32.totalorder %s948_s24, %s949_s9  ;;  %p954_p12 = scmp.lt.s32.totalorder %s948_s24, %s1285_s7 }
 0x833   : > { %p955_p13 = scmp.lt.s32.totalorder %s953_s25, %s949_s9 }
 0x834   : > { %p951_p10 = pnand %p950_p9, %p1105_p5 }
 0x835   : > { %p956_p0 = por %p955_p13, %p954_p12 }
 0x836   : > { %p952_p11 = pneg %p951_p10 }
 0x838   : > { %p957_p1 = pnand %p956_p0, %p952_p11 }
 0x898   : > { %v554_v14 = vpop.permute.xlu1 %553 }
 0x899   : > { %v555_v15 = vsel %vm446_vm1, %v554_v14, 0.0 }
 0x89a   : > { %v556_v16 = vsub.f32 %v752_v11, %v555_v15 }
 0x89c   : > { %v557_v17 = vpack.c.bf16 %v556_v16, %v556_v16 }
 0x89e   : > { %558 = vst [vmem:[%s347_s10] sm:$0xf] %v557_v17 }
 0x89f   : > { %960 = shalt.err (!%p957_p1)
}
 0x8a0   : > { %771 = dma.vmem_to_hbm [thread:$0]  (%p1105_p5), %s579_s12, 64, %s581_s19, %s561_s23  }
 0x8a1 PF: > { %p793_p2 = scmp.ge.s32.totalorder %s1007_s30, 2  ;;  %s606_s18 = sand.u32 1, %s995_s27  }
 0x8a2   : > { %s607_s21 = scalar_lea.sflag [#allocation4], %s606_s18 }
 0x8a3   : > { %p783_p3 = pnand %p793_p2, %p1109_p6 }
 0x8a5   : > { %p784_p4 = pneg %p783_p3 }
 0x8a7   : > { %986 = dma.done.wait (%p784_p4), %s607_s21, 64  }
 0x8a8   : > { %988 = vsyncadd (%p784_p4), %s607_s21, 4294967232  ;;  %s617_s26 = scalar_lea.sflag [#allocation9], %s606_s18 }
 0x8a9   : > { %990 = dma.done.wait (%p784_p4), %s617_s26, 128  }
 0x8aa   : > { %992 = vsyncadd (%p784_p4), %s617_s26, 4294967168  ;;  %p24_p5 = scmp.ge.s32.totalorder %s1092_s11, 4   ;;  %s1294_s27 = smov %s999_s28 }
 0x8ab   : > { %s1295_s28 = smov %s1003_s29  ;;  %s1296_s29 = smov %s1103_s14 }
 0x8ac   : > { %s1297_s30 = smov %s1092_s11  ;;  %26 = sbr.rel (!%p24_p5) target bundleno = 10 (0xa), region = 112 }
 0x8b1   :  { %623 = vsyncpa [#allocation3], 1 }
 0x8b2   :  { %625 = vsyncpa [#allocation3 + $0x1], 1 }
 0x8b3   :  { %626 = vsyncpa [#allocation6], 1 }
 0x8b4   :  { %627 = vsyncpa [#allocation4], 1 }
 0x8b5   :  { %629 = vsyncpa [#allocation4 + $0x1], 1 }
 0x8b6   :  { %630 = vsyncpa [#allocation9], 1 }
 0x8b7   :  { %632 = vsyncpa [#allocation9 + $0x1], 1 }

</bundles_post_ra>
